<compile_context>
chip_gen: v5e
topology: v5e:2x2
jax: 0.10.0
libtpu: 0.0.40
codegen_flags: <defaults>
</compile_context>

<pallas_src>
import functools

import jax
import jax.numpy as jnp
import numpy as np
from jax.experimental import pallas as pl
from jax.experimental.pallas import tpu as pltpu


def _round_up(x, m):
    return ((x + m - 1) // m) * m


def _recip(x):
    # EUP reciprocal (off the VALU); exact divide fallback on older jax.
    if hasattr(pl, "reciprocal"):
        return pl.reciprocal(x, approx=True)
    return 1.0 / x


def _navi_kernel(a_ref, at_ref, x_ref, w_ref, wt_ref, b_ref, bt_ref,
                 out_ref,
                 acc_ref, dsum_ref, wca_ref, wct_ref,
                 *, feat, tile, x_resident):
    r = pl.program_id(1)
    k = pl.program_id(2)
    nr = pl.num_programs(1)
    nk = pl.num_programs(2)

    @pl.when((r == 0) & (k == 0))
    def _init_row_block():
        acc_ref[...] = jnp.zeros_like(acc_ref)
        dsum_ref[...] = jnp.zeros_like(dsum_ref)

    @pl.when(k == 0)
    def _init_relation():
        wca_ref[...] = jnp.zeros_like(wca_ref)
        wct_ref[...] = jnp.zeros_like(wct_ref)

    # X carries an all-ones column at lane `feat`, so one MXU pass produces both
    # A@X and the exact row / column degrees (f32 accumulation of 0/1 products).
    if x_resident:
        off = pl.multiple_of(k * tile, tile)
        x = x_ref[pl.ds(off, tile), :]              # (tile, Fp) bf16
    else:
        x = x_ref[...]                              # (tile, Fp) bf16

    a = a_ref[0]                                    # (tile, tile) bf16, rows = out nodes
    at = at_ref[0]                                  # (tile, tile) bf16, rows = contraction
    # bf16 MXU matmuls, f32 accumulation (no f32 up-cast of the adjacency tiles).
    wca_ref[...] += jnp.dot(a, x, preferred_element_type=jnp.float32)
    # A^T contribution from the SAME adjacency array read at transposed tile
    # positions; the XLU tile transpose hides under the adjacency DMA.
    wct_ref[...] += jnp.dot(at.T, x, preferred_element_type=jnp.float32)

    @pl.when(k == nk - 1)
    def _finish_relation():
        def rel_contrib(wc, w_mat, b_row):
            deg = wc[:, feat:feat + 1]              # (tile, 1) exact degrees
            wcb = wc + deg * b_row                  # + diag(deg) @ repeat(bias)
            inv = _recip(jnp.where(deg == 0.0, 1.0, deg))
            contrib = jnp.dot(inv * wcb, w_mat,
                              preferred_element_type=jnp.float32)
            return contrib, (deg > 0.0).astype(jnp.float32)

        ca, da = rel_contrib(wca_ref[...], w_ref[0], b_ref[0])
        ct, dt = rel_contrib(wct_ref[...], wt_ref[0], bt_ref[0])
        acc_ref[...] += ca + ct
        dsum_ref[...] += da + dt

    @pl.when((r == nr - 1) & (k == nk - 1))
    def _finalize_output():
        d = dsum_ref[...]
        out_ref[...] = (acc_ref[...] *
                        _recip(jnp.where(d == 0.0, 1.0, d))).astype(out_ref.dtype)


def _vmem_capacity_bytes():
    """Generation-aware VMEM capacity; conservative (v7x-sized) fallback."""
    try:
        return int(pltpu.get_tpu_info().vmem_capacity_bytes)
    except Exception:
        return 64 * 1024 * 1024


def _vmem_estimate(T, Np, Fp, x_resident):
    adj = 2 * 2 * T * T * 2                        # 2 adjacency streams x 2 buffers, bf16
    xb = (2 * Np * Fp * 2) if x_resident else (2 * T * Fp * 2)
    wgt = 2 * 2 * Fp * Fp * 4 + 2 * 2 * Fp * 4     # per-relation W/W_t + biases, 2 buffers
    ob = 2 * T * Fp * 4                            # output block
    scr = (3 * T * Fp + T * 128) * 4               # f32 accumulators (+ padded dsum)
    tmp = T * T * 2 + 2 * T * Fp * 4               # transposed tile + matmul temporaries
    return adj + xb + wgt + ob + scr + tmp


def navi_diego_alt_forward(features, adjacencies, adjacencies_t,
                           w, bias, w_t, bias_t, *, tile=None):
    """Pallas implementation of Navi_Diego_alt.forward.

    features      : (N, F) float32
    adjacencies   : (R, N, N) dense 0/1
    adjacencies_t : assumed == transpose(adjacencies, (0, 2, 1)); NOT streamed
    w, w_t        : (R, F, F)   (input_size == output_size == F)
    bias, bias_t  : (R, F)
    returns       : (N, F) float32
    """
    # TODO(synk): adjacencies_t is assumed to be exactly the transposed stack;
    # add a second HBM stream if a caller ever supplies an unrelated stack.
    del adjacencies_t

    N, F = features.shape
    R = adjacencies.shape[0]
    f32, bf16 = jnp.float32, jnp.bfloat16

    cap = _vmem_capacity_bytes()
    budget = int(cap * 0.85)            # headroom for Mosaic internal scratch
    two_tc = cap < (96 << 20)           # v7x: 64 MiB per TC, 2 TCs per chip

    # Lane padding: feature width to a multiple of 128, with one extra column
    # (index F) reserved for the degree-producing ones column.
    Fp = _round_up(F + 1, 128)

    # Tile selection (tm == tk == T, required by the transposed-tile read).
    if tile is None:
        tile = 1024 if budget >= (90 << 20) else 512    # v5e/v6e vs v7x defaults
    T = _round_up(max(128, min(int(tile), _round_up(N, 128))), 128)
    Np0 = _round_up(N, 128)
    if two_tc and Np0 >= 256:
        # give each of the two TensorCores at least one row block
        T = min(T, _round_up(Np0 // 2, 128))
    while True:
        Np = _round_up(N, T)
        x_res = 4 * (2 * Np * Fp * 2) <= budget         # resident X <= 1/4 budget
        if _vmem_estimate(T, Np, Fp, x_res) <= budget or T <= 128:
            break
        T = max(128, T - 128)
    n = Np // T

    A = jnp.pad(adjacencies.astype(bf16), ((0, 0), (0, Np - N), (0, Np - N)))

    Xp = jnp.zeros((Np, Fp), bf16)
    Xp = Xp.at[:N, :F].set(features.astype(bf16))
    Xp = Xp.at[:, F].set(1.0)           # ones column -> degrees via the MXU

    Wp = jnp.zeros((R, Fp, Fp), f32).at[:, :F, :F].set(w.astype(f32))
    Wtp = jnp.zeros((R, Fp, Fp), f32).at[:, :F, :F].set(w_t.astype(f32))
    Bp = jnp.zeros((R, 1, Fp), f32).at[:, 0, :F].set(bias.astype(f32))
    Btp = jnp.zeros((R, 1, Fp), f32).at[:, 0, :F].set(bias_t.astype(f32))

    if x_res:
        x_spec = pl.BlockSpec((Np, Fp), lambda i, r, k: (0, 0))    # resident
    else:
        x_spec = pl.BlockSpec((T, Fp), lambda i, r, k: (k, 0))     # streamed per k

    vmem_limit = int(min(max(int(1.4 * _vmem_estimate(T, Np, Fp, x_res)),
                             32 << 20), budget))

    out = pl.pallas_call(
        functools.partial(_navi_kernel, feat=F, tile=T, x_resident=x_res),
        out_shape=jax.ShapeDtypeStruct((Np, Fp), f32),
        grid_spec=pltpu.PrefetchScalarGridSpec(
            num_scalar_prefetch=0,
            grid=(n, R, n),
            in_specs=[
                pl.BlockSpec((1, T, T), lambda i, r, k: (r, i, k)),    # A tile
                pl.BlockSpec((1, T, T), lambda i, r, k: (r, k, i)),    # A, A^T position
                x_spec,                                                # X (bf16)
                pl.BlockSpec((1, Fp, Fp), lambda i, r, k: (r, 0, 0)),  # W_r
                pl.BlockSpec((1, Fp, Fp), lambda i, r, k: (r, 0, 0)),  # W_t_r
                pl.BlockSpec((1, 1, Fp), lambda i, r, k: (r, 0, 0)),   # bias_r
                pl.BlockSpec((1, 1, Fp), lambda i, r, k: (r, 0, 0)),   # bias_t_r
            ],
            out_specs=pl.BlockSpec((T, Fp), lambda i, r, k: (i, 0)),
            scratch_shapes=[
                pltpu.VMEM((T, Fp), f32),    # output accumulator (over relations)
                pltpu.VMEM((T, 1), f32),     # binarized-degree accumulator
                pltpu.VMEM((T, Fp), f32),    # w_comp accumulator for A
                pltpu.VMEM((T, Fp), f32),    # w_comp accumulator for A^T
            ],
        ),
        compiler_params=pltpu.CompilerParams(
            dimension_semantics=("parallel", "arbitrary", "arbitrary"),
            vmem_limit_bytes=vmem_limit),
    )(A, A, Xp, Wp, Wtp, Bp, Btp)

    return out[:N, :F]


def reference_forward(features, adjacencies, adjacencies_t, w, bias, w_t, bias_t):
    """float64 numpy reference mirroring the torch forward (dense adjacencies)."""
    X = np.asarray(features, np.float64)
    out = np.zeros((X.shape[0], X.shape[1]), np.float64)
    deg_sum = np.zeros((X.shape[0],), np.float64)

    def per_rel(A, W, B):
        nonlocal out, deg_sum
        A = np.asarray(A, np.float64)
        W = np.asarray(W, np.float64)
        B = np.asarray(B, np.float64)
        deg = A.sum(axis=1)
        w_comp = A @ X + deg[:, None] * B[None, :]
        safe = np.where(deg == 0.0, 1.0, deg)
        out = out + ((1.0 / safe)[:, None] * w_comp) @ W
        deg_sum = deg_sum + (deg > 0.0).astype(np.float64)

    for i in range(adjacencies.shape[0]):
        per_rel(adjacencies[i], w[i], bias[i])
        per_rel(adjacencies_t[i], w_t[i], bias_t[i])

    full = np.where(deg_sum == 0.0, 1.0, deg_sum)
    return out / full[:, None]


if __name__ == "__main__":
    key = jax.random.PRNGKey(0)
    ks = jax.random.split(key, 3)

    def run_case(N, F, R, kseed, tile=None, random_params=False):
        k1, k2, k3, k4 = jax.random.split(kseed, 4)
        features = jax.random.normal(k1, (N, F), dtype=jnp.float32)
        adjacencies = (jax.random.uniform(k2, (R, N, N)) < 0.3).astype(jnp.float32)
        adjacencies_t = jnp.transpose(adjacencies, (0, 2, 1))
        if random_params:
            w = 0.1 * jax.random.normal(k3, (R, F, F), dtype=jnp.float32)
            b = 0.1 * jax.random.normal(k4, (R, F), dtype=jnp.float32)
            w_t, b_t = w + 0.05, b - 0.05
        else:
            # reset_parameters(): identity weights, zero biases
            w = jnp.tile(jnp.eye(F, dtype=jnp.float32)[None], (R, 1, 1))
            w_t = w
            b = jnp.zeros((R, F), jnp.float32)
            b_t = b

        out = navi_diego_alt_forward(features, adjacencies, adjacencies_t,
                                     w, b, w_t, b_t, tile=tile)
        out = jax.block_until_ready(out)
        ref = reference_forward(np.asarray(features), np.asarray(adjacencies),
                                np.asarray(adjacencies_t), np.asarray(w),
                                np.asarray(b), np.asarray(w_t), np.asarray(b_t))
        # bf16 feature stream + approx reciprocal -> ~1e-3 level error
        assert np.allclose(np.asarray(out), ref, atol=1e-2, rtol=1e-2), \
            f"mismatch vs reference (N={N}, random_params={random_params})"

    # module-default params (identity W, zero bias), tiny graph
    run_case(N=16, F=8, R=2, kseed=ks[0])
    # random params, tiny graph
    run_case(N=16, F=8, R=2, kseed=ks[1], random_params=True)
    # multi-block path: several row blocks and several contraction blocks
    run_case(N=300, F=8, R=2, kseed=ks[2], tile=128, random_params=True)

    print("KERNEL_OK")
</pallas_src>

<mosaic_0001>
module attributes {stable_mosaic.version = 11 : i64} {
  func.func @_navi_kernel(%arg0: i32, %arg1: i32, %arg2: i32, %arg3: memref<1x128x128xbf16, #tpu.memory_space<vmem>>, %arg4: memref<1x128x128xbf16, #tpu.memory_space<vmem>>, %arg5: memref<128x128xbf16, #tpu.memory_space<vmem>>, %arg6: memref<1x128x128xf32, #tpu.memory_space<vmem>>, %arg7: memref<1x128x128xf32, #tpu.memory_space<vmem>>, %arg8: memref<1x1x128xf32, #tpu.memory_space<vmem>>, %arg9: memref<1x1x128xf32, #tpu.memory_space<vmem>>, %arg10: memref<128x128xf32, #tpu.memory_space<vmem>>, %arg11: memref<128x128xf32, #tpu.memory_space<vmem>>, %arg12: memref<128x1xf32, #tpu.memory_space<vmem>>, %arg13: memref<128x128xf32, #tpu.memory_space<vmem>>, %arg14: memref<128x128xf32, #tpu.memory_space<vmem>>) attributes {dimension_semantics = [#tpu.dimension_semantics<parallel>, #tpu.dimension_semantics<arbitrary>, #tpu.dimension_semantics<arbitrary>], iteration_bounds = array<i64: 1, 2, 1>, scalar_prefetch = 0 : i64, scratch_operands = 4 : i64, tpu.core_type = #tpu.core_type<tc>, window_params = [{transform_indices = @transform_0, window_bounds = array<i64: 1, 128, 128>}, {transform_indices = @transform_1, window_bounds = array<i64: 1, 128, 128>}, {pipeline_mode = #tpu.pipeline_mode<synchronous>, transform_indices = @transform_2, window_bounds = array<i64: 128, 128>}, {transform_indices = @transform_3, window_bounds = array<i64: 1, 128, 128>}, {transform_indices = @transform_4, window_bounds = array<i64: 1, 128, 128>}, {transform_indices = @transform_5, window_bounds = array<i64: 1, 1, 128>}, {transform_indices = @transform_6, window_bounds = array<i64: 1, 1, 128>}, {transform_indices = @transform_7, window_bounds = array<i64: 128, 128>}]} {
    %c0_i32 = arith.constant 0 : i32
    %0 = arith.cmpi eq, %arg1, %c0_i32 : i32
    %c0_i32_0 = arith.constant 0 : i32
    %1 = arith.cmpi eq, %arg2, %c0_i32_0 : i32
    %2 = arith.andi %0, %1 : i1
    %3 = arith.extui %2 : i1 to i32
    %c0_i32_1 = arith.constant 0 : i32
    %4 = arith.cmpi ne, %3, %c0_i32_1 : i32
    scf.if %4 {
      %cst_23 = arith.constant 0.000000e+00 : f32
      %33 = vector.broadcast %cst_23 : f32 to vector<128x128xf32>
      %c0_24 = arith.constant 0 : index
      %c0_25 = arith.constant 0 : index
      %34 = vector.load %arg11[%c0_24, %c0_25] : memref<128x128xf32, #tpu.memory_space<vmem>>, vector<128x128xf32>
      tpu.vector_store %arg11[%c0_24, %c0_25], %33 {strides = array<i32>} : memref<128x128xf32, #tpu.memory_space<vmem>>, vector<128x128xf32>,
      %cst_26 = arith.constant 0.000000e+00 : f32
      %35 = vector.broadcast %cst_26 : f32 to vector<128x1xf32>
      %c0_27 = arith.constant 0 : index
      %c0_28 = arith.constant 0 : index
      %36 = vector.load %arg12[%c0_27, %c0_28] : memref<128x1xf32, #tpu.memory_space<vmem>>, vector<128x1xf32>
      tpu.vector_store %arg12[%c0_27, %c0_28], %35 {strides = array<i32>} : memref<128x1xf32, #tpu.memory_space<vmem>>, vector<128x1xf32>,
    } else {
    }
    %c0_i32_2 = arith.constant 0 : i32
    %5 = arith.cmpi eq, %arg2, %c0_i32_2 : i32
    %6 = arith.extui %5 : i1 to i32
    %c0_i32_3 = arith.constant 0 : i32
    %7 = arith.cmpi ne, %6, %c0_i32_3 : i32
    scf.if %7 {
      %cst_23 = arith.constant 0.000000e+00 : f32
      %33 = vector.broadcast %cst_23 : f32 to vector<128x128xf32>
      %c0_24 = arith.constant 0 : index
      %c0_25 = arith.constant 0 : index
      %34 = vector.load %arg13[%c0_24, %c0_25] : memref<128x128xf32, #tpu.memory_space<vmem>>, vector<128x128xf32>
      tpu.vector_store %arg13[%c0_24, %c0_25], %33 {strides = array<i32>} : memref<128x128xf32, #tpu.memory_space<vmem>>, vector<128x128xf32>,
      %cst_26 = arith.constant 0.000000e+00 : f32
      %35 = vector.broadcast %cst_26 : f32 to vector<128x128xf32>
      %c0_27 = arith.constant 0 : index
      %c0_28 = arith.constant 0 : index
      %36 = vector.load %arg14[%c0_27, %c0_28] : memref<128x128xf32, #tpu.memory_space<vmem>>, vector<128x128xf32>
      tpu.vector_store %arg14[%c0_27, %c0_28], %35 {strides = array<i32>} : memref<128x128xf32, #tpu.memory_space<vmem>>, vector<128x128xf32>,
    } else {
    }
    %c128_i32 = arith.constant 128 : i32
    %8 = arith.muli %arg2, %c128_i32 : i32
    %9 = tpu.assume_multiple %8, 128 : i32
    %10 = arith.index_cast %9 : i32 to index
    %c0 = arith.constant 0 : index
    %11 = vector.load %arg5[%10, %c0] : memref<128x128xbf16, #tpu.memory_space<vmem>>, vector<128x128xbf16>
    %c0_4 = arith.constant 0 : index
    %c0_5 = arith.constant 0 : index
    %c0_6 = arith.constant 0 : index
    %12 = vector.load %arg3[%c0_4, %c0_5, %c0_6] : memref<1x128x128xbf16, #tpu.memory_space<vmem>>, vector<1x128x128xbf16>
    %13 = vector.shape_cast %12 : vector<1x128x128xbf16> to vector<128x128xbf16>
    %c0_7 = arith.constant 0 : index
    %c0_8 = arith.constant 0 : index
    %c0_9 = arith.constant 0 : index
    %14 = vector.load %arg4[%c0_7, %c0_8, %c0_9] : memref<1x128x128xbf16, #tpu.memory_space<vmem>>, vector<1x128x128xbf16>
    %15 = vector.shape_cast %14 : vector<1x128x128xbf16> to vector<128x128xbf16>
    %c0_10 = arith.constant 0 : index
    %c0_11 = arith.constant 0 : index
    %16 = vector.load %arg13[%c0_10, %c0_11] : memref<128x128xf32, #tpu.memory_space<vmem>>, vector<128x128xf32>
    %cst = arith.constant dense<0.000000e+00> : vector<128x128xf32>
    %17 = tpu.matmul %13, %11, %cst {dimension_numbers = #tpu.dot_dimension_numbers<[1], [0], [0], [1], [0, 0, 1, 1], [], []>} : vector<128x128xbf16>, vector<128x128xbf16>, vector<128x128xf32> -> vector<128x128xf32>
    %18 = arith.addf %16, %17 : vector<128x128xf32>
    %c0_12 = arith.constant 0 : index
    %c0_13 = arith.constant 0 : index
    %19 = vector.load %arg13[%c0_12, %c0_13] : memref<128x128xf32, #tpu.memory_space<vmem>>, vector<128x128xf32>
    tpu.vector_store %arg13[%c0_12, %c0_13], %18 {strides = array<i32>} : memref<128x128xf32, #tpu.memory_space<vmem>>, vector<128x128xf32>,
    %c0_14 = arith.constant 0 : index
    %c0_15 = arith.constant 0 : index
    %20 = vector.load %arg14[%c0_14, %c0_15] : memref<128x128xf32, #tpu.memory_space<vmem>>, vector<128x128xf32>
    %21 = tpu.transpose %15, [1, 0] : vector<128x128xbf16> -> vector<128x128xbf16>
    %cst_16 = arith.constant dense<0.000000e+00> : vector<128x128xf32>
    %22 = tpu.matmul %21, %11, %cst_16 {dimension_numbers = #tpu.dot_dimension_numbers<[1], [0], [0], [1], [0, 0, 1, 1], [], []>} : vector<128x128xbf16>, vector<128x128xbf16>, vector<128x128xf32> -> vector<128x128xf32>
    %23 = arith.addf %20, %22 : vector<128x128xf32>
    %c0_17 = arith.constant 0 : index
    %c0_18 = arith.constant 0 : index
    %24 = vector.load %arg14[%c0_17, %c0_18] : memref<128x128xf32, #tpu.memory_space<vmem>>, vector<128x128xf32>
    tpu.vector_store %arg14[%c0_17, %c0_18], %23 {strides = array<i32>} : memref<128x128xf32, #tpu.memory_space<vmem>>, vector<128x128xf32>,
    %c0_i32_19 = arith.constant 0 : i32
    %25 = arith.cmpi eq, %arg2, %c0_i32_19 : i32
    %26 = arith.extui %25 : i1 to i32
    %c0_i32_20 = arith.constant 0 : i32
    %27 = arith.cmpi ne, %26, %c0_i32_20 : i32
    scf.if %27 {
      %c0_23 = arith.constant 0 : index
      %c0_24 = arith.constant 0 : index
      %33 = vector.load %arg13[%c0_23, %c0_24] : memref<128x128xf32, #tpu.memory_space<vmem>>, vector<128x128xf32>
      %c0_25 = arith.constant 0 : index
      %c0_26 = arith.constant 0 : index
      %c0_27 = arith.constant 0 : index
      %34 = vector.load %arg6[%c0_25, %c0_26, %c0_27] : memref<1x128x128xf32, #tpu.memory_space<vmem>>, vector<1x128x128xf32>
      %35 = vector.shape_cast %34 : vector<1x128x128xf32> to vector<128x128xf32>
      %c0_28 = arith.constant 0 : index
      %c0_29 = arith.constant 0 : index
      %c0_30 = arith.constant 0 : index
      %36 = vector.load %arg8[%c0_28, %c0_29, %c0_30] : memref<1x1x128xf32, #tpu.memory_space<vmem>>, vector<1x1x128xf32>
      %37 = vector.shape_cast %36 : vector<1x1x128xf32> to vector<1x128xf32>
      %38 = vector.extract_strided_slice %33 {offsets = [0, 8], sizes = [128, 1], strides = [1, 1]} : vector<128x128xf32> to vector<128x1xf32>
      %39 = vector.broadcast %38 : vector<128x1xf32> to vector<128x128xf32>
      %40 = vector.broadcast %37 : vector<1x128xf32> to vector<128x128xf32>
      %41 = arith.mulf %39, %40 : vector<128x128xf32>
      %42 = arith.addf %33, %41 : vector<128x128xf32>
      %cst_31 = arith.constant 0.000000e+00 : f32
      %43 = vector.broadcast %cst_31 : f32 to vector<128x1xf32>
      %44 = arith.cmpf oeq, %38, %43 : vector<128x1xf32>
      %cst_32 = arith.constant 1.000000e+00 : f32
      %45 = vector.broadcast %cst_32 : f32 to vector<128x1xf32>
      %46 = arith.select %44, %45, %38 : vector<128x1xi1>, vector<128x1xf32>
      %47 = tpu.reciprocal %46 {approx = true} : vector<128x1xf32> -> vector<128x1xf32>
      %48 = vector.broadcast %47 : vector<128x1xf32> to vector<128x128xf32>
      %49 = arith.mulf %48, %42 : vector<128x128xf32>
      %cst_33 = arith.constant dense<0.000000e+00> : vector<128x128xf32>
      %50 = tpu.matmul %49, %35, %cst_33 {dimension_numbers = #tpu.dot_dimension_numbers<[1], [0], [0], [1], [0, 0, 1, 1], [], []>} : vector<128x128xf32>, vector<128x128xf32>, vector<128x128xf32> -> vector<128x128xf32>
      %cst_34 = arith.constant 0.000000e+00 : f32
      %51 = vector.broadcast %cst_34 : f32 to vector<128x1xf32>
      %52 = arith.cmpf ogt, %38, %51 : vector<128x1xf32>
      %53 = arith.extui %52 : vector<128x1xi1> to vector<128x1xi32>
      %54 = arith.sitofp %53 : vector<128x1xi32> to vector<128x1xf32>
      %c0_35 = arith.constant 0 : index
      %c0_36 = arith.constant 0 : index
      %55 = vector.load %arg14[%c0_35, %c0_36] : memref<128x128xf32, #tpu.memory_space<vmem>>, vector<128x128xf32>
      %c0_37 = arith.constant 0 : index
      %c0_38 = arith.constant 0 : index
      %c0_39 = arith.constant 0 : index
      %56 = vector.load %arg7[%c0_37, %c0_38, %c0_39] : memref<1x128x128xf32, #tpu.memory_space<vmem>>, vector<1x128x128xf32>
      %57 = vector.shape_cast %56 : vector<1x128x128xf32> to vector<128x128xf32>
      %c0_40 = arith.constant 0 : index
      %c0_41 = arith.constant 0 : index
      %c0_42 = arith.constant 0 : index
      %58 = vector.load %arg9[%c0_40, %c0_41, %c0_42] : memref<1x1x128xf32, #tpu.memory_space<vmem>>, vector<1x1x128xf32>
      %59 = vector.shape_cast %58 : vector<1x1x128xf32> to vector<1x128xf32>
      %60 = vector.extract_strided_slice %55 {offsets = [0, 8], sizes = [128, 1], strides = [1, 1]} : vector<128x128xf32> to vector<128x1xf32>
      %61 = vector.broadcast %60 : vector<128x1xf32> to vector<128x128xf32>
      %62 = vector.broadcast %59 : vector<1x128xf32> to vector<128x128xf32>
      %63 = arith.mulf %61, %62 : vector<128x128xf32>
      %64 = arith.addf %55, %63 : vector<128x128xf32>
      %cst_43 = arith.constant 0.000000e+00 : f32
      %65 = vector.broadcast %cst_43 : f32 to vector<128x1xf32>
      %66 = arith.cmpf oeq, %60, %65 : vector<128x1xf32>
      %cst_44 = arith.constant 1.000000e+00 : f32
      %67 = vector.broadcast %cst_44 : f32 to vector<128x1xf32>
      %68 = arith.select %66, %67, %60 : vector<128x1xi1>, vector<128x1xf32>
      %69 = tpu.reciprocal %68 {approx = true} : vector<128x1xf32> -> vector<128x1xf32>
      %70 = vector.broadcast %69 : vector<128x1xf32> to vector<128x128xf32>
      %71 = arith.mulf %70, %64 : vector<128x128xf32>
      %cst_45 = arith.constant dense<0.000000e+00> : vector<128x128xf32>
      %72 = tpu.matmul %71, %57, %cst_45 {dimension_numbers = #tpu.dot_dimension_numbers<[1], [0], [0], [1], [0, 0, 1, 1], [], []>} : vector<128x128xf32>, vector<128x128xf32>, vector<128x128xf32> -> vector<128x128xf32>
      %cst_46 = arith.constant 0.000000e+00 : f32
      %73 = vector.broadcast %cst_46 : f32 to vector<128x1xf32>
      %74 = arith.cmpf ogt, %60, %73 : vector<128x1xf32>
      %75 = arith.extui %74 : vector<128x1xi1> to vector<128x1xi32>
      %76 = arith.sitofp %75 : vector<128x1xi32> to vector<128x1xf32>
      %c0_47 = arith.constant 0 : index
      %c0_48 = arith.constant 0 : index
      %77 = vector.load %arg11[%c0_47, %c0_48] : memref<128x128xf32, #tpu.memory_space<vmem>>, vector<128x128xf32>
      %78 = arith.addf %50, %72 : vector<128x128xf32>
      %79 = arith.addf %77, %78 : vector<128x128xf32>
      %c0_49 = arith.constant 0 : index
      %c0_50 = arith.constant 0 : index
      %80 = vector.load %arg11[%c0_49, %c0_50] : memref<128x128xf32, #tpu.memory_space<vmem>>, vector<128x128xf32>
      tpu.vector_store %arg11[%c0_49, %c0_50], %79 {strides = array<i32>} : memref<128x128xf32, #tpu.memory_space<vmem>>, vector<128x128xf32>,
      %c0_51 = arith.constant 0 : index
      %c0_52 = arith.constant 0 : index
      %81 = vector.load %arg12[%c0_51, %c0_52] : memref<128x1xf32, #tpu.memory_space<vmem>>, vector<128x1xf32>
      %82 = arith.addf %54, %76 : vector<128x1xf32>
      %83 = arith.addf %81, %82 : vector<128x1xf32>
      %c0_53 = arith.constant 0 : index
      %c0_54 = arith.constant 0 : index
      %84 = vector.load %arg12[%c0_53, %c0_54] : memref<128x1xf32, #tpu.memory_space<vmem>>, vector<128x1xf32>
      tpu.vector_store %arg12[%c0_53, %c0_54], %83 {strides = array<i32>} : memref<128x1xf32, #tpu.memory_space<vmem>>, vector<128x1xf32>,
    } else {
    }
    %c1_i32 = arith.constant 1 : i32
    %28 = arith.cmpi eq, %arg1, %c1_i32 : i32
    %c0_i32_21 = arith.constant 0 : i32
    %29 = arith.cmpi eq, %arg2, %c0_i32_21 : i32
    %30 = arith.andi %28, %29 : i1
    %31 = arith.extui %30 : i1 to i32
    %c0_i32_22 = arith.constant 0 : i32
    %32 = arith.cmpi ne, %31, %c0_i32_22 : i32
    scf.if %32 {
      %c0_23 = arith.constant 0 : index
      %c0_24 = arith.constant 0 : index
      %33 = vector.load %arg12[%c0_23, %c0_24] : memref<128x1xf32, #tpu.memory_space<vmem>>, vector<128x1xf32>
      %c0_25 = arith.constant 0 : index
      %c0_26 = arith.constant 0 : index
      %34 = vector.load %arg11[%c0_25, %c0_26] : memref<128x128xf32, #tpu.memory_space<vmem>>, vector<128x128xf32>
      %cst_27 = arith.constant 0.000000e+00 : f32
      %35 = vector.broadcast %cst_27 : f32 to vector<128x1xf32>
      %36 = arith.cmpf oeq, %33, %35 : vector<128x1xf32>
      %cst_28 = arith.constant 1.000000e+00 : f32
      %37 = vector.broadcast %cst_28 : f32 to vector<128x1xf32>
      %38 = arith.select %36, %37, %33 : vector<128x1xi1>, vector<128x1xf32>
      %39 = tpu.reciprocal %38 {approx = true} : vector<128x1xf32> -> vector<128x1xf32>
      %40 = vector.broadcast %39 : vector<128x1xf32> to vector<128x128xf32>
      %41 = arith.mulf %34, %40 : vector<128x128xf32>
      %c0_29 = arith.constant 0 : index
      %c0_30 = arith.constant 0 : index
      %42 = vector.load %arg10[%c0_29, %c0_30] : memref<128x128xf32, #tpu.memory_space<vmem>>, vector<128x128xf32>
      tpu.vector_store %arg10[%c0_29, %c0_30], %41 {strides = array<i32>} : memref<128x128xf32, #tpu.memory_space<vmem>>, vector<128x128xf32>,
    } else {
    }
    return
  }
  func.func @transform_0(%arg0: i32, %arg1: i32, %arg2: i32) -> (i32, i32, i32) {
    %c0_i32 = arith.constant 0 : i32
    return %arg1, %arg0, %arg2 : i32, i32, i32
  }
  func.func @transform_1(%arg0: i32, %arg1: i32, %arg2: i32) -> (i32, i32, i32) {
    %c0_i32 = arith.constant 0 : i32
    return %arg1, %arg2, %arg0 : i32, i32, i32
  }
  func.func @transform_2(%arg0: i32, %arg1: i32, %arg2: i32) -> (i32, i32) {
    %c0_i32 = arith.constant 0 : i32
    %c0_i32_0 = arith.constant 0 : i32
    %c0_i32_1 = arith.constant 0 : i32
    return %c0_i32, %c0_i32_0 : i32, i32
  }
  func.func @transform_3(%arg0: i32, %arg1: i32, %arg2: i32) -> (i32, i32, i32) {
    %c0_i32 = arith.constant 0 : i32
    %c0_i32_0 = arith.constant 0 : i32
    %c0_i32_1 = arith.constant 0 : i32
    return %arg1, %c0_i32, %c0_i32_0 : i32, i32, i32
  }
  func.func @transform_4(%arg0: i32, %arg1: i32, %arg2: i32) -> (i32, i32, i32) {
    %c0_i32 = arith.constant 0 : i32
    %c0_i32_0 = arith.constant 0 : i32
    %c0_i32_1 = arith.constant 0 : i32
    return %arg1, %c0_i32, %c0_i32_0 : i32, i32, i32
  }
  func.func @transform_5(%arg0: i32, %arg1: i32, %arg2: i32) -> (i32, i32, i32) {
    %c0_i32 = arith.constant 0 : i32
    %c0_i32_0 = arith.constant 0 : i32
    %c0_i32_1 = arith.constant 0 : i32
    return %arg1, %c0_i32, %c0_i32_0 : i32, i32, i32
  }
  func.func @transform_6(%arg0: i32, %arg1: i32, %arg2: i32) -> (i32, i32, i32) {
    %c0_i32 = arith.constant 0 : i32
    %c0_i32_0 = arith.constant 0 : i32
    %c0_i32_1 = arith.constant 0 : i32
    return %arg1, %c0_i32, %c0_i32_0 : i32, i32, i32
  }
  func.func @transform_7(%arg0: i32, %arg1: i32, %arg2: i32) -> (i32, i32) {
    %c0_i32 = arith.constant 0 : i32
    %c0_i32_0 = arith.constant 0 : i32
    return %arg0, %c0_i32 : i32, i32
  }
}

</mosaic_0001>

<bundles_post_ra>
// kernel: tpu_custom_call.1
= control target key start
LH: loop header
LB: loop body
LE: loop exit
PB: predicated region body
PF: predicated region fallthrough
CT: control target
= control target key end

     0   :  { %s3680_s0 = inlined_call_operand.hbm [shape: bf16[2,128,128], index: 0, kind: input, shape index: {}]   ;;  %s3681_s1 = inlined_call_operand.hbm [shape: bf16[2,128,128], index: 1, kind: input, shape index: {}]   ;;  %s3682_s2 = inlined_call_operand.hbm [shape: bf16[128,128], index: 2, kind: input, shape index: {}]   ;;  %s3683_s3 = inlined_call_operand.hbm [shape: f32[2,128,128], index: 3, kind: input, shape index: {}]   ;;  %s3684_s4 = inlined_call_operand.hbm [shape: f32[2,128,128], index: 4, kind: input, shape index: {}]   ;;  %s3685_s5 = inlined_call_operand.vmem [shape: f32[2,1,128], index: 5, kind: input, shape index: {}]   ;;  %s3686_s6 = inlined_call_operand.vmem [shape: f32[2,1,128], index: 6, kind: input, shape index: {}]   ;;  %s3687_s7 = inlined_call_operand.hbm [shape: f32[128,128], index: 7, kind: output, shape index: {}]  }
   0x1   :  { %3697 = sst [smem:[#allocation24_spill]] %s3680_s0 }
   0x2   :  { %3698 = sst [smem:[#allocation25_spill]] %s3682_s2 }
   0x3   :  { %3699 = sst [smem:[#allocation26_spill]] %s3683_s3 }
   0x4   :  { %3700 = sst [smem:[#allocation27_spill]] %s3686_s6 }
   0x5   :  { %3701 = sst [smem:[#allocation28_spill]] %s3687_s7 }
   0x6   :  { %12 = vsyncpa [#allocation7], 0 }
   0x7   :  { %14 = vsyncpa [#allocation7 + $0x1], 0 }
   0x8   :  { %15 = vsyncpa [#allocation10], 0 }
   0x9   :  { %17 = vsyncpa [#allocation10 + $0x1], 0 }
   0xa   :  { %18 = vsyncpa [#allocation13], 0 }
   0xb   :  { %20 = vsyncpa [#allocation13 + $0x1], 0 }
   0xc   :  { %21 = vsyncpa [#allocation8], 0  ;;  %s3035_s24 = smov 0   ;;  %s3037_s25 = smov 0  }
   0xd   :  { %s3039_s26 = smov 0   ;;  %s3041_s27 = smov 0  }
   0xe   :  { %s3043_s28 = smov 0   ;;  %s3045_s29 = smov 0  }
   0xf LB: > { %3702 = sst [smem:[#allocation21_spill]] %s2968_s26  ;;  %s3064_s30 = sadd.s32 4294967295, %s2980_s29   ;;  %s2980_s29 = sphi %s3045_s29, %s27_s29   ;;  %s2976_s28 = sphi %s3043_s28, %s3725_s28   ;;  %s2972_s27 = sphi %s3041_s27, %s3724_s27   ;;  %s2968_s26 = sphi %s3039_s26, %s3720_s26   ;;  %s2964_s25 = sphi %s3037_s25, %s3723_s25   ;;  %s2960_s24 = sphi %s3035_s24, %s3722_s24  }
  0x10   : > { %p70_p0 = scmp.ne.s32.totalorder %s2964_s25, %s2960_s24  ;;  %p71_p1 = scmp.eq.s32.totalorder %s3064_s30, 0 }
  0x11   : > { %p2345_p2 = scmp.ge.s32.totalorder %s2980_s29, 1  ;;  %p262_p3 = scmp.lt.s32.totalorder %s2980_s29, 3 }
  0x12   : > { %p3072_p4 = por %p71_p1, %p70_p0  ;;  %s3704_s2 = sld [smem:[#allocation25_spill]] }
  0x13   : > { %p3079_p5 = pnand %p2345_p2, %p262_p3  ;;  %s2982_s13 = smov [#allocation11]  }
  0x14   : > { %s275_s14 = sshll.u32 %s2982_s13, 4  ;;  %s3688_s15 = smov 64   ;;  %s276_s14 = int_to_ptr.vmem [resolvable:$true] %s275_s14 }
  0x15   : > { %p2549_p6 = pneg %p3079_p5  ;;  %s3690_s16 = smov 4  }
  0x16   : > { %s42_s17 = sadd.s32 1, %s2976_s28  ;;  %s57_s18 = sadd.s32 1, %s2968_s26 }
  0x17   : > { %p2550_p7 = pnand %p2549_p6, %p71_p1  ;;  %p44_p8 = scmp.ge.s32.totalorder %s42_s17, 2 }
  0x18   : > { %s273_s11 = sshll.u32 %s3704_s2, 4  ;;  %p64_p9 = scmp.ne.s32.totalorder %s2968_s26, %s2964_s25  ;;  %s274_s11 = int_to_ptr.hbm [resolvable:$true] %s273_s11 }
  0x19   : > { %2552 = dma.hbm_to_vmem [thread:$0]  (!%p2550_p7), %s274_s11, 1024, %s276_s14, [#allocation10], %s3688_s15, %s3688_s15, %s3690_s16  }
  0x1a   : > { %p65_p10 = scmp.eq.s32.totalorder %s2980_s29, 0  ;;  %s3727_s17 = smov (%p44_p8, %s42_s17), 0 }
  0x1b   : > { %3706 = sst [smem:[#allocation22_spill]] %s3727_s17  ;;  %p2567_p12 = scmp.lt.s32.totalorder %s2980_s29, 2 }
  0x1c   : > { %p66_p11 = por %p65_p10, %p64_p9  ;;  %s50_s19 = ssub.s32 %s2976_s28, %s3727_s17 }
  0x1d   : > { %s3101_s20 = sand.u32 1, %s2968_s26   ;;  %p55_p13 = scmp.eq.s32.totalorder %s50_s19, 0 }
  0x1e   : > { %p3103_p0 = pnand %p2567_p12, %p66_p11  ;;  %s3693_s22 = sand.u32 1, %s2980_s29  }
  0x1f   : > { %s2354_s23 = sshll.u32 %s3101_s20, 7  ;;  %s2502_s9 = sshll.u32 %s2976_s28, 7 }
  0x20   : > { %s3110_s24 = scalar_select %p55_p13, %s2968_s26, %s57_s18  }
  0x21   : > { %s343_s10 = scalar_lea.vmem [#allocation12], %s2354_s23  ;;  %s3709_s3 = sld [smem:[#allocation26_spill]] }
  0x22   : > { %3708 = sst [smem:[#allocation23_spill]] %s3110_s24  ;;  %s351_s11 = sshll.u32 %s343_s10, 4  ;;  %s352_s11 = int_to_ptr.vmem [resolvable:$true] %s351_s11 }
  0x23   : > { %s3118_s16 = scalar_lea.sflag [#allocation13], %s3693_s22  ;;  %s3695_s2 = smov 128  }
  0x24   : > { %s3696_s17 = smov 8   ;;  %s370_s13 = scalar_lea.hbm %s3684_s4, %s2502_s9 }
  0x25   : > { %s371_s14 = sshll.u32 %s370_s13, 4  ;;  %s2348_s22 = sshll.u32 %s3101_s20, 6  ;;  %s372_s14 = int_to_ptr.hbm [resolvable:$true] %s371_s14 }
  0x26   : > { %s2500_s24 = sshll.u32 %s2976_s28, 6  ;;  %s3710_s0 = sld [smem:[#allocation24_spill]] }
  0x27   : > { %s348_s15 = scalar_lea.hbm %s3709_s3, %s2502_s9  ;;  %s290_s9 = scalar_lea.sflag [#allocation7], %s3101_s20 }
  0x28   : > { %s349_s19 = sshll.u32 %s348_s15, 4  ;;  %s365_s15 = scalar_lea.vmem [#allocation14], %s2354_s23  ;;  %s350_s19 = int_to_ptr.hbm [resolvable:$true] %s349_s19 }
  0x29   : > { %2562 = dma.hbm_to_vmem [thread:$0]  (!%p3103_p0), %s350_s19, 2048, %s352_s11, %s3118_s16, %s3695_s2, %s3695_s2, %s3696_s17  }
  0x2a   : > { %s373_s3 = sshll.u32 %s365_s15, 4  ;;  %s293_s11 = scalar_lea.vmem [#allocation6], %s2348_s22  ;;  %s374_s3 = int_to_ptr.vmem [resolvable:$true] %s373_s3 }
  0x2b   : > { %s304_s19 = sshll.u32 %s293_s11, 4  ;;  %s3711_s23 = smov 4   ;;  %s305_s19 = int_to_ptr.vmem [resolvable:$true] %s304_s19 }
  0x2c   : > { %s301_s6 = scalar_lea.hbm %s3710_s0, %s2500_s24  ;;  %s3712_s10 = smov 64  }
  0x2d   : > { %s302_s18 = sshll.u32 %s301_s6, 4  ;;  %s326_s2 = scalar_lea.hbm %s3681_s1, %s2500_s24  ;;  %s303_s18 = int_to_ptr.hbm [resolvable:$true] %s302_s18 }
  0x2e   : > { %2556 = dma.hbm_to_vmem [thread:$0]  (!%p3103_p0), %s303_s18, 1024, %s305_s19, %s290_s9, %s3712_s10, %s3712_s10, %s3711_s23  }
  0x2f   : > { %s318_s7 = scalar_lea.vmem [#allocation9], %s2348_s22  ;;  %s327_s17 = sshll.u32 %s326_s2, 4  ;;  %s328_s17 = int_to_ptr.hbm [resolvable:$true] %s327_s17 }
  0x30   : > { %s329_s26 = sshll.u32 %s318_s7, 4  ;;  %s3713_s0 = sand.u32 1, %s2980_s29   ;;  %s330_s26 = int_to_ptr.vmem [resolvable:$true] %s329_s26 }
  0x31   : > { %s315_s11 = scalar_lea.sflag [#allocation10], %s3713_s0  ;;  %s3714_s6 = smov 8  }
  0x32   : > { %2559 = dma.hbm_to_vmem [thread:$0]  (!%p3103_p0), %s328_s17, 1024, %s330_s26, %s315_s11, %s3712_s10, %s3712_s10, %s3711_s23  }
  0x33   : > { %s3715_s20 = smov 128   ;;  %397 = sbr.rel (%p3079_p5) target bundleno = 915 (0x393), region = 48 }
  0x34   : > { %2565 = dma.hbm_to_vmem [thread:$0]  (!%p3103_p0), %s372_s14, 2048, %s374_s3, %s3118_s16, %s3715_s20, %s3715_s20, %s3714_s6  }
  0x35   : > { %s399_s2 = sand.u32 (!%p3079_p5), 1, %s2964_s25  }
  0x36   : > { %s2361_s22 = sshll.u32 (!%p3079_p5), %s399_s2, 6  ;;  %s400_s24 = scalar_lea.sflag (!%p3079_p5), [#allocation7], %s399_s2 }
  0x37   : > { %s3159_s19 = scalar_lea.vmem (!%p3079_p5), [#allocation6], %s2361_s22 }
  0x38   : > { %2939 = dma.done.wait (%p3072_p4), %s400_s24, 1024  }
  0x39   : > { %2941 = vsyncadd (%p3072_p4), %s400_s24, 4294966272  ;;  %s409_s0 = sand.u32 1, %s3064_s30   ;;  %s3166_s3 = scalar_lea.vmem [#allocation9], %s2361_s22 }
  0x3a   : > { %s410_s17 = scalar_lea.sflag [#allocation10], %s409_s0 }
  0x3b   : > { %2943 = dma.done.wait (%p3072_p4), %s410_s17, 1024  }
  0x3c   : > { %2945 = vsyncadd (%p3072_p4), %s410_s17, 4294966272 }
  0x3d   : > { %2947 = dma.done.wait (%p71_p1), [#allocation10], 1024  }
  0x3e   : > { %2949 = vsyncadd (%p71_p1), [#allocation10], 4294966272  ;;  %s2364_s12 = sshll.u32 %s399_s2, 7  ;;  %s425_s16 = scalar_lea.sflag [#allocation13], %s409_s0 }
  0x3f   : > { %s3176_s21 = scalar_lea.vmem [#allocation12], %s2364_s12 }
  0x40   : > { %2951 = dma.done.wait (%p3072_p4), %s425_s16, 4096  }
  0x41   : > { %2953 = vsyncadd (%p3072_p4), %s425_s16, 4294963200  ;;  %p488_p2 = scmp.lt.s32.totalorder %s2972_s27, 1  ;;  %p495_p3 = scmp.eq.s32.totalorder %s2972_s27, 0 }
  0x42   : > { %s3716_s15 = sld [smem:[#allocation27_spill]]  ;;  %s3195_s26 = scalar_lea.vmem [#allocation14], %s2364_s12  ;;  %v2987_v0 = vmov (%p495_p3), 0.0   ;;  %vm517_vm0 = vcmask (%p495_p3), 7168  }
  0x43   : > { %s3185_s14 = scalar_select %p488_p2, %s2972_s27, 1  ;;  %501 = vst [vmem:[#allocation2 + $0x30] sm:$0xff] (%p495_p3), %v2987_v0 }
  0x44   : > { %500 = sbr.rel (!%p495_p3) target bundleno = 99 (0x63), region = 72  ;;  %502 = vst [vmem:[#allocation2] sm:$0xff] (%p495_p3), %v2987_v0 }
  0x45   : > { %s490_s23 = scalar_lea.vmem %s3685_s5, %s3185_s14  ;;  %503 = vst [vmem:[#allocation2 + $0x58] sm:$0xff] (%p495_p3), %v2987_v0 }
  0x46   : > { %504 = vst [vmem:[#allocation2 + $0x18] sm:$0xff] (%p495_p3), %v2987_v0 }
  0x47   : > { %505 = vst [vmem:[#allocation2 + $0x50] sm:$0xff] (%p495_p3), %v2987_v0 }
  0x48   : > { %s493_s7 = scalar_lea.vmem %s3716_s15, %s3185_s14  ;;  %506 = vst [vmem:[#allocation2 + $0x68] sm:$0xff] (%p495_p3), %v2987_v0 }
  0x49   : > { %507 = vst [vmem:[#allocation2 + $0x8] sm:$0xff] %v2987_v0 }
  0x4a   : > { %508 = vst [vmem:[#allocation2 + $0x48] sm:$0xff] %v2987_v0 }
  0x4b   : > { %509 = vst [vmem:[#allocation2 + $0x40] sm:$0xff] %v2987_v0 }
  0x4c   : > { %510 = vst [vmem:[#allocation2 + $0x20] sm:$0xff] %v2987_v0 }
  0x4d   : > { %511 = vst [vmem:[#allocation2 + $0x10] sm:$0xff] %v2987_v0 }
  0x4e   : > { %512 = vst [vmem:[#allocation2 + $0x38] sm:$0xff] %v2987_v0 }
  0x4f   : > { %513 = vst [vmem:[#allocation2 + $0x60] sm:$0xff] %v2987_v0 }
  0x50   : > { %514 = vst [vmem:[#allocation2 + $0x70] sm:$0xff] %v2987_v0 }
  0x51   : > { %515 = vst [vmem:[#allocation2 + $0x78] sm:$0xff] %v2987_v0 }
  0x52   : > { %516 = vst [vmem:[#allocation2 + $0x28] sm:$0xff] %v2987_v0 }
  0x53   : > { %518 = vst.msk [vmem:[#allocation3] sm:$0xff] %vm517_vm0, %v2987_v0 }
  0x54   : > { %519 = vst.msk [vmem:[#allocation3 + $0x8] sm:$0xff] %vm517_vm0, %v2987_v0 }
  0x55   : > { %520 = vst.msk [vmem:[#allocation3 + $0x10] sm:$0xff] %vm517_vm0, %v2987_v0 }
  0x56   : > { %521 = vst.msk [vmem:[#allocation3 + $0x18] sm:$0xff] %vm517_vm0, %v2987_v0 }
  0x57   : > { %522 = vst.msk [vmem:[#allocation3 + $0x20] sm:$0xff] %vm517_vm0, %v2987_v0 }
  0x58   : > { %523 = vst.msk [vmem:[#allocation3 + $0x28] sm:$0xff] %vm517_vm0, %v2987_v0 }
  0x59   : > { %524 = vst.msk [vmem:[#allocation3 + $0x30] sm:$0xff] %vm517_vm0, %v2987_v0 }
  0x5a   : > { %525 = vst.msk [vmem:[#allocation3 + $0x38] sm:$0xff] %vm517_vm0, %v2987_v0 }
  0x5b   : > { %526 = vst.msk [vmem:[#allocation3 + $0x40] sm:$0xff] %vm517_vm0, %v2987_v0 }
  0x5c   : > { %527 = vst.msk [vmem:[#allocation3 + $0x48] sm:$0xff] %vm517_vm0, %v2987_v0 }
  0x5d   : > { %528 = vst.msk [vmem:[#allocation3 + $0x50] sm:$0xff] %vm517_vm0, %v2987_v0 }
  0x5e   : > { %529 = vst.msk [vmem:[#allocation3 + $0x58] sm:$0xff] %vm517_vm0, %v2987_v0 }
  0x5f   : > { %530 = vst.msk [vmem:[#allocation3 + $0x60] sm:$0xff] %vm517_vm0, %v2987_v0 }
  0x60   : > { %531 = vst.msk [vmem:[#allocation3 + $0x68] sm:$0xff] %vm517_vm0, %v2987_v0 }
  0x61   : > { %532 = vst.msk [vmem:[#allocation3 + $0x70] sm:$0xff] %vm517_vm0, %v2987_v0 }
  0x62   : > { %533 = vst.msk [vmem:[#allocation3 + $0x78] sm:$0xff] %vm517_vm0, %v2987_v0 }
  0x63 PF: > { %v2521_v1 = vld [vmem:[%s3166_s3] sm:$0xff]  ;;  %v2512_v2 = vld [vmem:[#allocation11 + $0x38] sm:$0xff]  ;;  %v2511_v3 = vld [vmem:[#allocation11 + $0x30] sm:$0xff]  ;;  %v2988_v23 = vmov 8   ;;  %s2990_s6 = smov 120   ;;  %p1966_p1 = scmp.eq.s32.totalorder %s2972_s27, 1 }
  0x64   : > { %879 = vxpose.xlu0.c.b16.start [1/8] %v2521_v1, 128  ;;  %734 = vmatpush.bf16.msra.mxu0 %v2512_v2  ;;  %v2510_v4 = vld [vmem:[#allocation11 + $0x28] sm:$0xff]  ;;  %v2509_v5 = vld [vmem:[#allocation11 + $0x20] sm:$0xff]  ;;  %v2508_v7 = vld [vmem:[#allocation11 + $0x18] sm:$0xff] }
  0x65   : > { %895 = vmatpush.bf16.msra.mxu1 %v2512_v2  ;;  %v2522_v6 = vld [vmem:[%s3166_s3 + $0x8] sm:$0xff]  ;;  %v2507_v8 = vld [vmem:[#allocation11 + $0x10] sm:$0xff]  ;;  %v2505_v10 = vld [vmem:[#allocation11] sm:$0xff]  ;;  %2632 = vset.pattern.permute.xlu1 %v2988_v23 }
  0x66   : > { %v2506_v9 = vld [vmem:[#allocation11 + $0x8] sm:$0xff]  ;;  %v2513_v11 = vld [vmem:[%s3159_s19] sm:$0xff]  ;;  %v2523_v12 = vld [vmem:[%s3166_s3 + $0x10] sm:$0xff]  ;;  %2633 = vset.pattern.permute.xlu2 %v2988_v23 }
  0x67   : > { %v2514_v13 = vld [vmem:[%s3159_s19 + $0x8] sm:$0xff]  ;;  %v2524_v14 = vld [vmem:[%s3166_s3 + $0x18] sm:$0xff]  ;;  %v2515_v15 = vld [vmem:[%s3159_s19 + $0x10] sm:$0xff] }
  0x68   : > { %735 = vmatpush.bf16.msra.mxu0 %v2511_v3  ;;  %v2525_v16 = vld [vmem:[%s3166_s3 + $0x20] sm:$0xff]  ;;  %v2516_v17 = vld [vmem:[%s3159_s19 + $0x18] sm:$0xff]  ;;  %v2526_v18 = vld [vmem:[%s3166_s3 + $0x28] sm:$0xff] }
  0x69   : > { %896 = vmatpush.bf16.msra.mxu1 %v2511_v3  ;;  %v2517_v19 = vld [vmem:[%s3159_s19 + $0x20] sm:$0xff]  ;;  %v2527_v20 = vld [vmem:[%s3166_s3 + $0x30] sm:$0xff]  ;;  %v2518_v21 = vld [vmem:[%s3159_s19 + $0x28] sm:$0xff] }
  0x6a   : > { %v2528_v22 = vld [vmem:[%s3166_s3 + $0x38] sm:$0xff]  ;;  %v2519_v24 = vld [vmem:[%s3159_s19 + $0x30] sm:$0xff]  ;;  %v1008_v54 = vld [vmem:[%s3176_s21 + $0x68] sm:$0xff] }
  0x6b   : > { %v2520_v25 = vld [vmem:[%s3159_s19 + $0x38] sm:$0xff]  ;;  %v1009_v53 = vld [vmem:[%s3176_s21 + $0x70] sm:$0xff]  ;;  %v1007_v55 = vld [vmem:[%s3176_s21 + $0x60] sm:$0xff] }
  0x6c   : > { %736 = vmatpush.bf16.msra.mxu0 %v2510_v4  ;;  %v1010_v51 = vld [vmem:[%s3176_s21 + $0x78] sm:$0xff]  ;;  %v1005_v59 = vld [vmem:[%s3176_s21 + $0x50] sm:$0xff]  ;;  %v1004_v60 = vld [vmem:[%s3176_s21 + $0x48] sm:$0xff] }
  0x6d   : > { %897 = vmatpush.bf16.msra.mxu1 %v2510_v4  ;;  %1740 = vmatpush.msra.mxu3 %v1010_v51  ;;  %v1006_v56 = vld [vmem:[%s3176_s21 + $0x58] sm:$0xff]  ;;  %v1003_v61 = vld [vmem:[%s3176_s21 + $0x40] sm:$0xff]  ;;  %v1001_v0 = vld [vmem:[%s3176_s21 + $0x30] sm:$0xff] }
  0x6e   : > { %v1002_v62 = vld [vmem:[%s3176_s21 + $0x38] sm:$0xff]  ;;  %v1000_v1 = vld [vmem:[%s3176_s21 + $0x28] sm:$0xff]  ;;  %v999_v2 = vld [vmem:[%s3176_s21 + $0x20] sm:$0xff] }
  0x6f   : > { %1741 = vmatpush.msra.mxu3 %v1009_v53  ;;  %v998_v3 = vld [vmem:[%s3176_s21 + $0x18] sm:$0xff] }
  0x70   : > { %737 = vmatpush.bf16.msra.mxu0 %v2509_v5 }
  0x71   : > { %898 = vmatpush.bf16.msra.mxu1 %v2509_v5  ;;  %1742 = vmatpush.msra.mxu3 %v1008_v54 }
  0x73   : > { %1743 = vmatpush.msra.mxu3 %v1007_v55 }
  0x74   : > { %880 = vxpose.xlu0.c.b16.cont [2/8] %v2522_v6, 128  ;;  %738 = vmatpush.bf16.msra.mxu0 %v2508_v7  ;;  %v997_v6 = vld [vmem:[%s3176_s21 + $0x10] sm:$0xff] }
  0x75   : > { %899 = vmatpush.bf16.msra.mxu1 %v2508_v7  ;;  %1744 = vmatpush.msra.mxu3 %v1006_v56  ;;  %v996_v7 = vld [vmem:[%s3176_s21 + $0x8] sm:$0xff] }
  0x77   : > { %1745 = vmatpush.msra.mxu3 %v1005_v59 }
  0x78   : > { %739 = vmatpush.bf16.msra.mxu0 %v2507_v8 }
  0x79   : > { %900 = vmatpush.bf16.msra.mxu1 %v2507_v8  ;;  %1746 = vmatpush.msra.mxu3 %v1004_v60  ;;  %v995_v8 = vld [vmem:[%s3176_s21] sm:$0xff] }
  0x7b   : > { %1747 = vmatpush.msra.mxu3 %v1003_v61 }
  0x7c   : > { %740 = vmatpush.bf16.msra.mxu0 %v2506_v9 }
  0x7d   : > { %901 = vmatpush.bf16.msra.mxu1 %v2506_v9  ;;  %1748 = vmatpush.msra.mxu3 %v1002_v62 }
  0x7f   : > { %1749 = vmatpush.msra.mxu3 %v1001_v0 }
  0x80   : > { %741 = vmatpush.bf16.msra.mxu0 %v2505_v10 }
  0x81   : > { %902 = vmatpush.bf16.msra.mxu1 %v2505_v10  ;;  %1750 = vmatpush.msra.mxu3 %v1000_v1 }
  0x83   : > { %742 = vmatmul.bf16.vlgmr.msra.gmra.mxu0 %v2513_v11  ;;  %1751 = vmatpush.msra.mxu3 %v999_v2 }
  0x84   : > { %881 = vxpose.xlu0.c.b16.cont [3/8] %v2523_v12, 128 }
  0x85   : > { %1752 = vmatpush.msra.mxu3 %v998_v3 }
  0x87   : > { %1753 = vmatpush.msra.mxu3 %v997_v6 }
  0x89   : > { %1754 = vmatpush.msra.mxu3 %v996_v7 }
  0x8b   : > { %1755 = vmatpush.msra.mxu3 %v995_v8 }
  0x93   : > { %747 = vmatmul.bf16.gmra.mxu0 %v2514_v13 }
  0x94   : > { %882 = vxpose.xlu0.c.b16.cont [4/8] %v2524_v14, 128 }
  0xa3   : > { %752 = vmatmul.bf16.gmra.mxu0 %v2515_v15 }
  0xa4   : > { %883 = vxpose.xlu0.c.b16.cont [5/8] %v2525_v16, 128  ;;  %v3310_v16 = vld [vmem:[%s490_s23] ss:$0 sm:$0xff] }
  0xb3   : > { %757 = vmatmul.bf16.gmra.mxu0 %v2516_v17 }
  0xb4   : > { %884 = vxpose.xlu0.c.b16.cont [6/8] %v2526_v18, 128 }
  0xc3   : > { %762 = vmatmul.bf16.gmra.mxu0 %v2517_v19 }
  0xc4   : > { %885 = vxpose.xlu0.c.b16.cont [7/8] %v2527_v20, 128 }
  0xd3   : > { %767 = vmatmul.bf16.gmra.mxu0 %v2518_v21 }
  0xd4   : > { %886 = vxpose.xlu0.c.b16.end [8/8] %v2528_v22, 128 }
  0xe3   : > { %772 = vmatmul.bf16.gmra.mxu0 %v2519_v24 }
  0xf3   : > { %777 = vmatmul.bf16.gmra.mxu0 %v2520_v25 }
 0x100   : > { %v3229_v26 = vpop.f32.mrf.mxu0 }
 0x101   : > { %1014 = vperm.xlu1 %2632, %v3229_v26   ;;  %vm1127_vm1 = vcmp.eq.f32.partialorder %v3229_v26, 0.0 }
 0x102   : > { %v1143_v27 = vsel %vm1127_vm1, 1.0, %v3229_v26 }
 0x103   : > { %2637 = vrcp.f32 %v1143_v27 }
 0x108   : > { %v3234_v28 = vpop.f32.mrf.mxu0 }
 0x109   : > { %1019 = vperm.xlu1 %2632, %v3234_v28   ;;  %vm1128_vm2 = vcmp.eq.f32.partialorder %v3234_v28, 0.0  ;;  %v2638_v29 = vpop.eup %2637 }
 0x10a   : > { %v1144_v30 = vsel %vm1128_vm2, 1.0, %v3234_v28 }
 0x10b   : > { %2639 = vrcp.f32 %v1144_v30 }
 0x110   : > { %v887_v31 = vpop.trf.xlu0  ;;  %v3239_v32 = vpop.f32.mrf.mxu0 }
 0x111   : > { %vm1129_vm3 = vcmp.eq.f32.partialorder %v3239_v32, 0.0  ;;  %903 = vmatmul.bf16.vlgmr.msra.gmra.mxu1 %v887_v31  ;;  %1177 = vperm.xlu1 %2632, %v2638_v29   ;;  %v2640_v34 = vpop.eup %2639 }
 0x112   : > { %v1145_v33 = vsel %vm1129_vm3, 1.0, %v3239_v32  ;;  %1024 = vperm.xlu2 %2633, %v3239_v32  }
 0x113   : > { %2641 = vrcp.f32 %v1145_v33 }
 0x118   : > { %v3244_v35 = vpop.f32.mrf.mxu0 }
 0x119   : > { %v2642_v36 = vpop.eup %2641  ;;  %vm1130_vm4 = vcmp.eq.f32.partialorder %v3244_v35, 0.0 }
 0x11a   : > { %1182 = vperm.xlu2 %2633, %v2640_v34   ;;  %1187 = vperm.xlu1 %2632, %v2642_v36   ;;  %v1146_v37 = vsel %vm1130_vm4, 1.0, %v3244_v35 }
 0x11b   : > { %2643 = vrcp.f32 %v1146_v37 }
 0x120   : > { %v888_v38 = vpop.trf.xlu0  ;;  %v3248_v39 = vpop.f32.mrf.mxu0 }
 0x121   : > { %vm1131_vm5 = vcmp.eq.f32.partialorder %v3248_v39, 0.0  ;;  %908 = vmatmul.bf16.gmra.mxu1 %v888_v38  ;;  %v2644_v41 = vpop.eup %2643 }
 0x122   : > { %v1147_v40 = vsel %vm1131_vm5, 1.0, %v3248_v39  ;;  %1029 = vperm.xlu2 %2633, %v3244_v35   ;;  %1034 = vperm.xlu1 %2632, %v3248_v39  }
 0x123   : > { %2645 = vrcp.f32 %v1147_v40 }
 0x128   : > { %v3254_v42 = vpop.f32.mrf.mxu0 }
 0x129   : > { %v2646_v43 = vpop.eup %2645  ;;  %vm1132_vm6 = vcmp.eq.f32.partialorder %v3254_v42, 0.0 }
 0x12a   : > { %1192 = vperm.xlu2 %2633, %v2644_v41   ;;  %1197 = vperm.xlu1 %2632, %v2646_v43   ;;  %v1148_v44 = vsel %vm1132_vm6, 1.0, %v3254_v42  ;;  %vm1272_vm6 = vcmp.gt.f32.partialorder %v3234_v28, 0.0 }
 0x12b   : > { %2647 = vrcp.f32 %v1148_v44 }
 0x130   : > { %v889_v45 = vpop.trf.xlu0  ;;  %v3258_v46 = vpop.f32.mrf.mxu0 }
 0x131   : > { %913 = vmatmul.bf16.gmra.mxu1 %v889_v45  ;;  %v2648_v47 = vpop.eup %2647  ;;  %vm1133_vm10 = vcmp.eq.f32.partialorder %v3258_v46, 0.0 }
 0x132   : > { %1039 = vperm.xlu2 %2633, %v3254_v42   ;;  %1044 = vperm.xlu1 %2632, %v3258_v46   ;;  %v1149_v60 = vsel %vm1133_vm10, 1.0, %v3258_v46 }
 0x138   : > { %v3262_v48 = vpop.f32.mrf.mxu0 }
 0x139   : > { %vm1134_vm11 = vcmp.eq.f32.partialorder %v3262_v48, 0.0 }
 0x13a   : > { %1202 = vperm.xlu2 %2633, %v2648_v47   ;;  %v1150_v61 = vsel %vm1134_vm11, 1.0, %v3262_v48  ;;  %vm1278_vm11 = vcmp.gt.f32.partialorder %v3262_v48, 0.0 }
 0x13b   : > { %2634 = vset.pattern.permute.xlu0 %v2988_v23 }
 0x140   : > { %v890_v49 = vpop.trf.xlu0  ;;  %v3264_v50 = vpop.f32.mrf.mxu0 }
 0x141   : > { %918 = vmatmul.bf16.gmra.mxu1 %v890_v49  ;;  %1054 = vperm.xlu1 %2632, %v3264_v50   ;;  %vm1135_vm12 = vcmp.eq.f32.partialorder %v3264_v50, 0.0 }
 0x142   : > { %1049 = vperm.xlu2 %2633, %v3262_v48  }
 0x148   : > { %v3269_v52 = vpop.f32.mrf.mxu0 }
 0x149   : > { %vm1136_vm14 = vcmp.eq.f32.partialorder %v3269_v52, 0.0 }
 0x14a   : > { %1059 = vperm.xlu2 %2633, %v3269_v52  }
 0x150   : > { %v891_v57 = vpop.trf.xlu0  ;;  %v3276_v58 = vpop.f32.mrf.mxu0 }
 0x151   : > { %923 = vmatmul.bf16.gmra.mxu1 %v891_v57  ;;  %1064 = vperm.xlu1 %2632, %v3276_v58   ;;  %vm1137_vm15 = vcmp.eq.f32.partialorder %v3276_v58, 0.0 }
 0x158   : > { %v3283_v63 = vpop.f32.mrf.mxu0 }
 0x159   : > { %1069 = vperm.xlu2 %2633, %v3283_v63   ;;  %vm1138_vm1 = vcmp.eq.f32.partialorder %v3283_v63, 0.0 }
 0x160   : > { %v892_v4 = vpop.trf.xlu0  ;;  %v3290_v5 = vpop.f32.mrf.mxu0 }
 0x161   : > { %928 = vmatmul.bf16.gmra.mxu1 %v892_v4  ;;  %1074 = vperm.xlu1 %2632, %v3290_v5   ;;  %v1151_v4 = vsel %vm1135_vm12, 1.0, %v3264_v50  ;;  %vm1139_vm2 = vcmp.eq.f32.partialorder %v3290_v5, 0.0 }
 0x168   : > { %v3296_v9 = vpop.f32.mrf.mxu0 }
 0x169   : > { %1079 = vperm.xlu2 %2633, %v3296_v9  }
 0x16c   : > { %v1025_v13 = vpop.permute.xlu2 %1024 }
 0x16d   : > { %v1097_v30 = vmul.f32 %v3310_v16, %v1025_v13 }
 0x16f   : > { %v1113_v34 = vadd.f32 %v1097_v30, %v3239_v32 }
 0x170   : > { %v893_v10 = vpop.trf.xlu0  ;;  %v3299_v11 = vpop.f32.mrf.mxu0 }
 0x171   : > { %933 = vmatmul.bf16.gmra.mxu1 %v893_v10  ;;  %1084 = vperm.xlu1 %2632, %v3299_v11   ;;  %vm1141_vm13 = vcmp.eq.f32.partialorder %v3299_v11, 0.0  ;;  %v1152_v10 = vsel %vm1136_vm14, 1.0, %v3269_v52  ;;  %vm1281_vm14 = vcmp.gt.f32.partialorder %v3276_v58, 0.0 }
 0x172   : > { %v1157_v7 = vsel %vm1141_vm13, 1.0, %v3299_v11 }
 0x173   : > { %v1015_v12 = vpop.permute.xlu1 %1014 }
 0x174   : > { %v1095_v17 = vmul.f32 %v3310_v16, %v1015_v12  ;;  %v1183_v19 = vpop.permute.xlu2 %1182 }
 0x176   : > { %v1111_v20 = vadd.f32 %v1095_v17, %v3229_v26 }
 0x178   : > { %v3302_v14 = vpop.f32.mrf.mxu0 }
 0x179   : > { %1089 = vperm.xlu2 %2633, %v3302_v14   ;;  %vm1142_vm0 = vcmp.eq.f32.partialorder %v3302_v14, 0.0 }
 0x17b   : > { %v1020_v15 = vpop.permute.xlu1 %1019 }
 0x17c   : > { %v1096_v22 = vmul.f32 %v3310_v16, %v1020_v15  ;;  %v1030_v25 = vpop.permute.xlu2 %1029  ;;  %v1153_v15 = vsel %vm1137_vm15, 1.0, %v3276_v58 }
 0x17d   : > { %v1098_v38 = vmul.f32 %v3310_v16, %v1030_v25 }
 0x17e   : > { %v1112_v24 = vadd.f32 %v1096_v22, %v3234_v28 }
 0x17f   : > { %v1114_v45 = vadd.f32 %v1098_v38, %v3244_v35 }
 0x180   : > { %v894_v18 = vpop.trf.xlu0  ;;  %v1256_v27 = vmul.f32 %v1183_v19, %v1112_v24  ;;  %v1155_v24 = vsel %vm1139_vm2, 1.0, %v3290_v5 }
 0x181   : > { %938 = vmatmul.bf16.gmra.mxu1 %v894_v18  ;;  %v1158_v18 = vsel %vm1142_vm0, 1.0, %v3302_v14 }
 0x183   : > { %v1178_v21 = vpop.permute.xlu1 %1177 }
 0x184   : > { %v1255_v23 = vmul.f32 %v1178_v21, %v1111_v20  ;;  %v1193_v37 = vpop.permute.xlu2 %1192  ;;  %v1154_v20 = vsel %vm1138_vm1, 1.0, %v3283_v63 }
 0x185   : > { %v1258_v47 = vmul.f32 %v1193_v37, %v1114_v45  ;;  %v1350_v45 = vld [vmem:[%s3195_s26 + $0x78] sm:$0xff] }
 0x186   : > { %1756 = vmatmul.f32.vlgmr.msra.gmra.mxu3 %v1255_v23  ;;  %1611 = vmatpush.msra.mxu2 %v1350_v45 }
 0x18c   : > { %v1188_v29 = vpop.permute.xlu1 %1187  ;;  %v1040_v54 = vpop.permute.xlu2 %1039 }
 0x18d   : > { %v1257_v36 = vmul.f32 %v1188_v29, %v1113_v34  ;;  %v1100_v62 = vmul.f32 %v3310_v16, %v1040_v54 }
 0x18e   : > { %v3317_v31 = vpop.f32.mrf.mxu1  ;;  %1759 = vmatmul.f32.gmra.mxu3 %v1256_v27 }
 0x18f   : > { %vm1467_vm7 = vcmp.eq.f32.partialorder %v3317_v31, 0.0  ;;  %1354 = vperm.xlu1 %2632, %v3317_v31   ;;  %v1116_v3 = vadd.f32 %v1100_v62, %v3254_v42 }
 0x190   : > { %v1483_v33 = vsel %vm1467_vm7, 1.0, %v3317_v31 }
 0x191   : > { %2649 = vrcp.f32 %v1483_v33  ;;  %v2989_v33 = vmov 0.0  }
 0x192   : > { %v2464_v37 = vsel %vm1272_vm6, 1.0, %v2989_v33 }
 0x194   : > { %v1035_v43 = vpop.permute.xlu1 %1034  ;;  %v1203_v2 = vpop.permute.xlu2 %1202 }
 0x195   : > { %v1099_v49 = vmul.f32 %v3310_v16, %v1035_v43  ;;  %v1260_v6 = vmul.f32 %v1203_v2, %v1116_v3  ;;  %v1344_v2 = vld [vmem:[%s3195_s26 + $0x48] sm:$0xff]  ;;  %v2470_v3 = vsel %vm1278_vm11, 1.0, %v2989_v33 }
 0x196   : > { %v3324_v40 = vpop.f32.mrf.mxu1  ;;  %1762 = vmatmul.f32.gmra.mxu3 %v1257_v36 }
 0x197   : > { %v2650_v41 = vpop.eup %2649  ;;  %vm1468_vm8 = vcmp.eq.f32.partialorder %v3324_v40, 0.0  ;;  %1359 = vperm.xlu1 %2632, %v3324_v40   ;;  %v1115_v57 = vadd.f32 %v1099_v49, %v3248_v39  ;;  %vm1677_vm4 = vcmp.gt.f32.partialorder %v3324_v40, 0.0 }
 0x198   : > { %v1484_v44 = vsel %vm1468_vm8, 1.0, %v3324_v40  ;;  %1517 = vperm.xlu2 %2633, %v2650_v41   ;;  %v2480_v34 = vsel %vm1677_vm4, 1.0, %v2989_v33  ;;  %vm1275_vm8 = vcmp.gt.f32.partialorder %v3248_v39, 0.0  ;;  %v1347_v39 = vld [vmem:[%s3195_s26 + $0x60] sm:$0xff] }
 0x199   : > { %2651 = vrcp.f32 %v1484_v44  ;;  %v1854_v38 = vadd.f32 %v2480_v34, %v2464_v37 }
 0x19c   : > { %v1198_v56 = vpop.permute.xlu1 %1197  ;;  %v3379_v28 = vpop.permute.xlu2 %1049 }
 0x19d   : > { %v1259_v59 = vmul.f32 %v1198_v56, %v1115_v57 }
 0x19e   : > { %v3331_v51 = vpop.f32.mrf.mxu1  ;;  %1765 = vmatmul.f32.gmra.mxu3 %v1258_v47  ;;  %v1349_v47 = vld [vmem:[%s3195_s26 + $0x70] sm:$0xff] }
 0x19f   : > { %v2652_v53 = vpop.eup %2651  ;;  %vm1469_vm9 = vcmp.eq.f32.partialorder %v3331_v51, 0.0  ;;  %1364 = vperm.xlu1 %2632, %v3331_v51   ;;  %1612 = vmatpush.msra.mxu2 %v1349_v47  ;;  %vm1678_vm11 = vcmp.gt.f32.partialorder %v3331_v51, 0.0 }
 0x1a0   : > { %v1485_v55 = vsel %vm1469_vm9, 1.0, %v3331_v51  ;;  %1522 = vperm.xlu2 %2633, %v2652_v53   ;;  %v1348_v53 = vld [vmem:[%s3195_s26 + $0x68] sm:$0xff] }
 0x1a1   : > { %2653 = vrcp.f32 %v1485_v55  ;;  %v2467_v55 = vsel %vm1275_vm8, 1.0, %v2989_v33  ;;  %1613 = vmatpush.msra.mxu2 %v1348_v53  ;;  %vm1140_vm8 = vcmp.eq.f32.partialorder %v3296_v9, 0.0 }
 0x1a2   : > { %2655 = vrcp.f32 %v1149_v60  ;;  %v1346_v60 = vld [vmem:[%s3195_s26 + $0x58] sm:$0xff] }
 0x1a3   : > { %2657 = vrcp.f32 %v1150_v61  ;;  %1614 = vmatpush.msra.mxu2 %v1347_v39 }
 0x1a4   : > { %2659 = vrcp.f32 %v1151_v4  ;;  %v3397_v61 = vpop.permute.xlu2 %1059 }
 0x1a5   : > { %2661 = vrcp.f32 %v1157_v7  ;;  %1615 = vmatpush.msra.mxu2 %v1346_v60 }
 0x1a6   : > { %v3342_v0 = vpop.f32.mrf.mxu1  ;;  %1768 = vmatmul.f32.gmra.mxu3 %v1259_v59  ;;  %2663 = vrcp.f32 %v1152_v10  ;;  %v1343_v10 = vld [vmem:[%s3195_s26 + $0x40] sm:$0xff] }
 0x1a7   : > { %v2654_v1 = vpop.eup %2653  ;;  %1369 = vperm.xlu1 %2632, %v3342_v0   ;;  %2665 = vrcp.f32 %v1153_v15  ;;  %vm1470_vm3 = vcmp.eq.f32.partialorder %v3342_v0, 0.0  ;;  %v1342_v15 = vld [vmem:[%s3195_s26 + $0x38] sm:$0xff] }
 0x1a8   : > { %1527 = vperm.xlu2 %2633, %v2654_v1   ;;  %v2656_v8 = vpop.eup %2655  ;;  %2667 = vrcp.f32 %v1158_v18  ;;  %v1486_v27 = vsel %vm1470_vm3, 1.0, %v3342_v0  ;;  %v1345_v1 = vld [vmem:[%s3195_s26 + $0x50] sm:$0xff]  ;;  %vm1284_vm3 = vcmp.gt.f32.partialorder %v3296_v9, 0.0 }
 0x1a9   : > { %v2658_v13 = vpop.eup %2657  ;;  %2669 = vrcp.f32 %v1154_v20  ;;  %1616 = vmatpush.msra.mxu2 %v1345_v1  ;;  %v1341_v18 = vld [vmem:[%s3195_s26 + $0x30] sm:$0xff] }
 0x1aa   : > { %v2660_v17 = vpop.eup %2659  ;;  %2671 = vrcp.f32 %v1155_v24  ;;  %v1339_v24 = vld [vmem:[%s3195_s26 + $0x20] sm:$0xff] }
 0x1ab   : > { %v2662_v19 = vpop.eup %2661  ;;  %2673 = vrcp.f32 %v1486_v27  ;;  %1617 = vmatpush.msra.mxu2 %v1344_v2 }
 0x1ac   : > { %v2664_v22 = vpop.eup %2663 }
 0x1ad   : > { %v2666_v23 = vpop.eup %2665  ;;  %1618 = vmatpush.msra.mxu2 %v1343_v10 }
 0x1ae   : > { %v3352_v12 = vpop.f32.mrf.mxu1  ;;  %1771 = vmatmul.f32.gmra.mxu3 %v1260_v6  ;;  %v2668_v25 = vpop.eup %2667 }
 0x1af   : > { %1374 = vperm.xlu0 %2634, %v3352_v12   ;;  %1207 = vperm.xlu1 %2632, %v2656_v8   ;;  %v2670_v30 = vpop.eup %2669  ;;  %vm1471_vm5 = vcmp.eq.f32.partialorder %v3352_v12, 0.0  ;;  %vm1680_vm7 = vcmp.gt.f32.partialorder %v3352_v12, 0.0 }
 0x1b0   : > { %1212 = vperm.xlu2 %2633, %v2658_v13   ;;  %v1487_v36 = vsel %vm1471_vm5, 1.0, %v3352_v12  ;;  %v2672_v41 = vpop.eup %2671  ;;  %v2483_v49 = vsel %vm1680_vm7, 1.0, %v2989_v33  ;;  %v3410_v13 = vpop.permute.xlu1 %1044  ;;  %1619 = vmatpush.msra.mxu2 %v1342_v15 }
 0x1b1   : > { %2675 = vrcp.f32 %v1487_v36  ;;  %v2674_v44 = vpop.eup %2673  ;;  %v1857_v57 = vadd.f32 %v2483_v49, %v2467_v55  ;;  %v1338_v36 = vld [vmem:[%s3195_s26 + $0x18] sm:$0xff]  ;;  %v1335_v49 = vld [vmem:[%s3195_s26] sm:$0xff] }
 0x1b2   : > { %1620 = vmatpush.msra.mxu2 %v1341_v18  ;;  %v3471_v18 = vld [vmem:[%s493_s7] ss:$0 sm:$0xff] }
 0x1b6   : > { %v3361_v21 = vpop.f32.mrf.mxu1 }
 0x1b7   : > { %1217 = vperm.xlu1 %2632, %v2660_v17   ;;  %1247 = vperm.xlu0 %2634, %v2662_v19   ;;  %vm1472_vm9 = vcmp.eq.f32.partialorder %v3361_v21, 0.0  ;;  %v2676_v54 = vpop.eup %2675  ;;  %v3413_v17 = vpop.permute.xlu2 %1069  ;;  %v1340_v19 = vld [vmem:[%s3195_s26 + $0x28] sm:$0xff] }
 0x1b8   : > { %1222 = vperm.xlu2 %2633, %v2664_v22   ;;  %v1488_v56 = vsel %vm1472_vm9, 1.0, %v3361_v21  ;;  %1621 = vmatpush.msra.mxu2 %v1340_v19 }
 0x1b9   : > { %2677 = vrcp.f32 %v1488_v56 }
 0x1ba   : > { %1622 = vmatpush.msra.mxu2 %v1339_v24 }
 0x1bc   : > { %1623 = vmatpush.msra.mxu2 %v1338_v36 }
 0x1be   : > { %v3367_v29 = vpop.f32.mrf.mxu1 }
 0x1bf   : > { %1227 = vperm.xlu1 %2632, %v2666_v23   ;;  %1252 = vperm.xlu0 %2634, %v2668_v25   ;;  %vm1473_vm12 = vcmp.eq.f32.partialorder %v3367_v29, 0.0  ;;  %v2678_v6 = vpop.eup %2677  ;;  %v2473_v25 = vsel %vm1281_vm14, 1.0, %v2989_v33  ;;  %vm1271_vm14 = vcmp.gt.f32.partialorder %v3229_v26, 0.0 }
 0x1c0   : > { %1232 = vperm.xlu2 %2633, %v2670_v30   ;;  %v1489_v7 = vsel %vm1473_vm12, 1.0, %v3367_v29  ;;  %v3427_v30 = vpop.permute.xlu1 %1054  ;;  %vm1676_vm12 = vcmp.gt.f32.partialorder %v3317_v31, 0.0 }
 0x1c1   : > { %2679 = vrcp.f32 %v1489_v7 }
 0x1c3   : > { %v3430_v37 = vpop.permute.xlu2 %1079 }
 0x1c6   : > { %v3375_v43 = vpop.f32.mrf.mxu1 }
 0x1c7   : > { %1237 = vperm.xlu1 %2632, %v2672_v41   ;;  %1887 = vrot.lane.b32.xlu0 %v1854_v38, %s2990_s6  ;;  %vm1683_vm10 = vcmp.gt.f32.partialorder %v3375_v43, 0.0  ;;  %vm1474_vm13 = vcmp.eq.f32.partialorder %v3375_v43, 0.0  ;;  %v2680_v23 = vpop.eup %2679  ;;  %v1337_v38 = vld [vmem:[%s3195_s26 + $0x10] sm:$0xff]  ;;  %v1336_v41 = vld [vmem:[%s3195_s26 + $0x8] sm:$0xff] }
 0x1c8   : > { %1532 = vperm.xlu2 %2633, %v2674_v44   ;;  %v2486_v62 = vsel %vm1683_vm10, 1.0, %v2989_v33  ;;  %v1490_v20 = vsel %vm1474_vm13, 1.0, %v3375_v43  ;;  %1624 = vmatpush.msra.mxu2 %v1337_v38  ;;  %v3441_v53 = vpop.permute.xlu1 %1064  ;;  %vm1273_vm13 = vcmp.gt.f32.partialorder %v3239_v32, 0.0  ;;  %v1103_v32 = vmul.f32 %v3310_v16, %v3427_v30 }
 0x1c9   : > { %v1860_v4 = vadd.f32 %v2486_v62, %v2470_v3  ;;  %2681 = vrcp.f32 %v1490_v20  ;;  %v2476_v3 = vsel %vm1284_vm3, 1.0, %v2989_v33 }
 0x1ca   : > { %1625 = vmatpush.msra.mxu2 %v1336_v41 }
 0x1cc   : > { %1626 = vmatpush.msra.mxu2 %v1335_v49 }
 0x1ce   : > { %v3389_v59 = vpop.f32.mrf.mxu1 }
 0x1cf   : > { %1537 = vperm.xlu1 %2632, %v2676_v54   ;;  %1893 = vrot.lane.b32.xlu0 %v1857_v57, %s2990_s6  ;;  %vm1475_vm0 = vcmp.eq.f32.partialorder %v3389_v59, 0.0  ;;  %v2682_v44 = vpop.eup %2681  ;;  %vm1684_vm3 = vcmp.gt.f32.partialorder %v3389_v59, 0.0 }
 0x1d0   : > { %1379 = vperm.xlu2 %2633, %v3361_v21   ;;  %v1491_v45 = vsel %vm1475_vm0, 1.0, %v3389_v59  ;;  %vm1679_vm0 = vcmp.gt.f32.partialorder %v3342_v0, 0.0 }
 0x1d1   : > { %2683 = vrcp.f32 %v1491_v45 }
 0x1d3   : > { %v3443_v54 = vpop.permute.xlu2 %1089  ;;  %v3450_v39 = vpop.permute.xlu1 %1074 }
 0x1d6   : > { %v3405_v8 = vpop.f32.mrf.mxu1 }
 0x1d7   : > { %1542 = vperm.xlu1 %2632, %v2678_v6   ;;  %1899 = vrot.lane.b32.xlu0 %v1860_v4, %s2990_s6  ;;  %vm1476_vm1 = vcmp.eq.f32.partialorder %v3405_v8, 0.0  ;;  %v2684_v57 = vpop.eup %2683 }
 0x1d8   : > { %1384 = vperm.xlu2 %2633, %v3367_v29   ;;  %v1492_v55 = vsel %vm1476_vm1, 1.0, %v3405_v8  ;;  %vm1276_vm1 = vcmp.gt.f32.partialorder %v3254_v42, 0.0 }
 0x1d9   : > { %2685 = vrcp.f32 %v1492_v55  ;;  %v1156_v55 = vsel %vm1140_vm8, 1.0, %v3296_v9 }
 0x1de   : > { %v3420_v22 = vpop.f32.mrf.mxu1 }
 0x1df   : > { %1389 = vperm.xlu1 %2632, %v3375_v43   ;;  %vm1686_vm15 = vcmp.gt.f32.partialorder %v3420_v22, 0.0  ;;  %vm1477_vm2 = vcmp.eq.f32.partialorder %v3420_v22, 0.0  ;;  %v2686_v62 = vpop.eup %2685 }
 0x1e0   : > { %1547 = vperm.xlu2 %2633, %v2680_v23   ;;  %v2489_v27 = vsel %vm1686_vm15, 1.0, %v2989_v33  ;;  %v1493_v1 = vsel %vm1477_vm2, 1.0, %v3420_v22  ;;  %vm1681_vm15 = vcmp.gt.f32.partialorder %v3361_v21, 0.0  ;;  %vm1274_vm2 = vcmp.gt.f32.partialorder %v3244_v35, 0.0 }
 0x1e1   : > { %v1863_v34 = vadd.f32 %v2489_v27, %v2473_v25  ;;  %2687 = vrcp.f32 %v1493_v1  ;;  %v2466_v42 = vsel %vm1274_vm2, 1.0, %v2989_v33 }
 0x1e3   : > { %1905 = vrot.lane.b32.xlu0 %v1863_v34, %s2990_s6  ;;  %v3461_v6 = vpop.permute.xlu1 %1084 }
 0x1e6   : > { %v3437_v47 = vpop.f32.mrf.mxu1 }
 0x1e7   : > { %1552 = vperm.xlu1 %2632, %v2682_v44   ;;  %vm1478_vm5 = vcmp.eq.f32.partialorder %v3437_v47, 0.0  ;;  %v2688_v19 = vpop.eup %2687  ;;  %vm1687_vm8 = vcmp.gt.f32.partialorder %v3437_v47, 0.0 }
 0x1e8   : > { %1394 = vperm.xlu2 %2633, %v3389_v59   ;;  %v1494_v15 = vsel %vm1478_vm5, 1.0, %v3437_v47  ;;  %vm1949_vm5 = vcmask 7168  }
 0x1e9   : > { %2689 = vrcp.f32 %v1494_v15 }
 0x1ee   : > { %v3447_v56 = vpop.f32.mrf.mxu1 }
 0x1ef   : > { %1399 = vperm.xlu1 %2632, %v3405_v8   ;;  %vm1479_vm6 = vcmp.eq.f32.partialorder %v3447_v56, 0.0  ;;  %v2690_v27 = vpop.eup %2689 }
 0x1f0   : > { %1557 = vperm.xlu2 %2633, %v2684_v57   ;;  %v1495_v34 = vsel %vm1479_vm6, 1.0, %v3447_v56  ;;  %vm1279_vm6 = vcmp.gt.f32.partialorder %v3264_v50, 0.0 }
 0x1f1   : > { %2691 = vrcp.f32 %v1495_v34  ;;  %v1101_v34 = vmul.f32 %v3310_v16, %v3410_v13  ;;  %v1109_v13 = vmul.f32 %v3310_v16, %v3461_v6 }
 0x1f2   : > { %v1518_v60 = vpop.permute.xlu2 %1517 }
 0x1f6   : > { %v3455_v2 = vpop.f32.mrf.mxu1 }
 0x1f7   : > { %1562 = vperm.xlu1 %2632, %v2686_v62   ;;  %vm1689_vm4 = vcmp.gt.f32.partialorder %v3455_v2, 0.0  ;;  %vm1480_vm7 = vcmp.eq.f32.partialorder %v3455_v2, 0.0 }
 0x1f8   : > { %1404 = vperm.xlu2 %2633, %v3420_v22   ;;  %v2492_v4 = vsel %vm1689_vm4, 1.0, %v2989_v33  ;;  %v1496_v49 = vsel %vm1480_vm7, 1.0, %v3455_v2  ;;  %vm1682_vm4 = vcmp.gt.f32.partialorder %v3367_v29, 0.0  ;;  %vm1277_vm7 = vcmp.gt.f32.partialorder %v3258_v46, 0.0 }
 0x1f9   : > { %v1866_v7 = vadd.f32 %v2492_v4, %v2476_v3  ;;  %2693 = vrcp.f32 %v1496_v49 }
 0x1fa   : > { %v1523_v10 = vpop.permute.xlu2 %1522  ;;  %2695 = vrcp.f32 %v1156_v55 }
 0x1fb   : > { %1911 = vrot.lane.b32.xlu0 %v1866_v7, %s2990_s6 }
 0x1fe   : > { %v3485_v62 = vpop.f32.mrf.mxu1 }
 0x1ff   : > { %1409 = vperm.xlu1 %2632, %v3437_v47   ;;  %vm1481_vm9 = vcmp.eq.f32.partialorder %v3485_v62, 0.0 }
 0x200   : > { %1567 = vperm.xlu2 %2633, %v2688_v19   ;;  %v1497_v4 = vsel %vm1481_vm9, 1.0, %v3485_v62  ;;  %vm1685_vm9 = vcmp.gt.f32.partialorder %v3405_v8, 0.0 }
 0x201   : > { %v1355_v20 = vpop.permute.xlu1 %1354  ;;  %2697 = vrcp.f32 %v1497_v4  ;;  %v1125_v4 = vadd.f32 %v1109_v13, %v3299_v11 }
 0x202   : > { %v1435_v23 = vmul.f32 %v3471_v18, %v1355_v20  ;;  %v1528_v24 = vpop.permute.xlu2 %1527 }
 0x204   : > { %v1451_v25 = vadd.f32 %v1435_v23, %v3317_v31  ;;  %v1110_v31 = vmul.f32 %v3310_v16, %v3443_v54  ;;  %v1119_v54 = vadd.f32 %v1103_v32, %v3264_v50  ;;  %v1105_v50 = vmul.f32 %v3310_v16, %v3441_v53 }
 0x206   : > { %v1595_v36 = vmul.f32 %v1518_v60, %v1451_v25  ;;  %v2692_v60 = vpop.eup %2691  ;;  %v3494_v20 = vpop.f32.mrf.mxu1  ;;  %v1126_v26 = vadd.f32 %v1110_v31, %v3302_v14 }
 0x207   : > { %1572 = vperm.xlu1 %2632, %v2690_v27   ;;  %vm1482_vm10 = vcmp.eq.f32.partialorder %v3494_v20, 0.0 }
 0x208   : > { %1414 = vperm.xlu2 %2633, %v3447_v56   ;;  %1627 = vmatmul.f32.vlgmr.msra.gmra.mxu2 %v1595_v36  ;;  %v1498_v36 = vsel %vm1482_vm10, 1.0, %v3494_v20  ;;  %vm1282_vm10 = vcmp.gt.f32.partialorder %v3283_v63, 0.0 }
 0x209   : > { %v1360_v38 = vpop.permute.xlu1 %1359  ;;  %2699 = vrcp.f32 %v1498_v36 }
 0x20a   : > { %v1436_v41 = vmul.f32 %v3471_v18, %v1360_v38  ;;  %v1213_v44 = vpop.permute.xlu2 %1212 }
 0x20c   : > { %v1452_v45 = vadd.f32 %v1436_v41, %v3324_v40  ;;  %v1117_v41 = vadd.f32 %v1101_v34, %v3258_v46  ;;  %v2463_v34 = vsel %vm1271_vm14, 1.0, %v2989_v33  ;;  %v1841_v46 = vld [vmem:[#allocation3 + $0x20] sm:$0xff]  ;;  %vm1285_vm14 = vcmp.gt.f32.partialorder %v3299_v11, 0.0 }
 0x20e   : > { %v1596_v57 = vmul.f32 %v1523_v10, %v1452_v45  ;;  %v2694_v10 = vpop.eup %2693 }
 0x20f   : > { %1419 = vperm.xlu1 %2632, %v3455_v2   ;;  %v2696_v19 = vpop.eup %2695 }
 0x210   : > { %1577 = vperm.xlu2 %2633, %v2692_v60   ;;  %1630 = vmatmul.f32.gmra.mxu2 %v1596_v57  ;;  %v2698_v27 = vpop.eup %2697 }
 0x211   : > { %v1365_v1 = vpop.permute.xlu1 %1364 }
 0x212   : > { %v1437_v3 = vmul.f32 %v3471_v18, %v1365_v1  ;;  %v3490_v40 = vpop.permute.xlu2 %1222  ;;  %v1102_v1 = vmul.f32 %v3310_v16, %v3379_v28 }
 0x214   : > { %v1453_v7 = vadd.f32 %v1437_v3, %v3331_v51  ;;  %v2700_v3 = vpop.eup %2699 }
 0x216   : > { %v1597_v15 = vmul.f32 %v1528_v24, %v1453_v7  ;;  %v1118_v7 = vadd.f32 %v1102_v1, %v3262_v48  ;;  %v2465_v48 = vsel %vm1273_vm13, 1.0, %v2989_v33  ;;  %v1838_v1 = vld [vmem:[#allocation3 + $0x8] sm:$0xff]  ;;  %vm1688_vm13 = vcmp.gt.f32.partialorder %v3447_v56, 0.0 }
 0x217   : > { %1582 = vperm.xlu1 %2632, %v2694_v10  }
 0x218   : > { %1242 = vperm.xlu2 %2633, %v2696_v19   ;;  %1633 = vmatmul.f32.gmra.mxu2 %v1597_v15  ;;  %v2481_v19 = vsel %vm1678_vm11, 1.0, %v2989_v33  ;;  %v1262_v51 = vmul.f32 %v1213_v44, %v1118_v7  ;;  %vm1280_vm11 = vcmp.gt.f32.partialorder %v3269_v52, 0.0 }
 0x219   : > { %v1370_v23 = vpop.permute.xlu1 %1369 }
 0x21a   : > { %v3497_v25 = vpop.permute.xlu2 %1232  ;;  %v1438_v38 = vmul.f32 %v3471_v18, %v1370_v23  ;;  %v2479_v23 = vsel %vm1676_vm12, 1.0, %v2989_v33  ;;  %vm1690_vm12 = vcmp.gt.f32.partialorder %v3485_v62, 0.0 }
 0x21b   : > { %v1853_v36 = vadd.f32 %v2479_v23, %v2463_v34 }
 0x21c   : > { %v1454_v45 = vadd.f32 %v1438_v38, %v3342_v0  ;;  %v1104_v0 = vmul.f32 %v3310_v16, %v3397_v61 }
 0x21e   : > { %v1120_v35 = vadd.f32 %v1104_v0, %v3269_v52 }
 0x21f   : > { %1587 = vperm.xlu1 %2632, %v2698_v27   ;;  %v1855_v27 = vadd.f32 %v2481_v19, %v2465_v48  ;;  %v2485_v19 = vsel %vm1682_vm4, 1.0, %v2989_v33  ;;  %v2469_v48 = vsel %vm1277_vm7, 1.0, %v2989_v33 }
 0x220   : > { %1424 = vperm.xlu2 %2633, %v3485_v62   ;;  %v1859_v32 = vadd.f32 %v2485_v19, %v2469_v48 }
 0x221   : > { %v3504_v24 = vpop.permute.xlu0 %1374  ;;  %v1208_v49 = vpop.permute.xlu1 %1207 }
 0x222   : > { %v1533_v55 = vpop.permute.xlu2 %1532  ;;  %v1261_v57 = vmul.f32 %v1208_v49, %v1117_v41  ;;  %v1439_v23 = vmul.f32 %v3471_v18, %v3504_v24 }
 0x223   : > { %v1598_v60 = vmul.f32 %v1533_v55, %v1454_v45  ;;  %v2484_v45 = vsel %vm1681_vm15, 1.0, %v2989_v33  ;;  %v2482_v55 = vsel %vm1679_vm0, 1.0, %v2989_v33  ;;  %vm1283_vm15 = vcmp.gt.f32.partialorder %v3290_v5, 0.0 }
 0x224   : > { %1774 = vmatmul.f32.gmra.mxu3 %v1261_v57  ;;  %v2468_v57 = vsel %vm1276_vm1, 1.0, %v2989_v33  ;;  %v1856_v13 = vadd.f32 %v2482_v55, %v2466_v42  ;;  %v1455_v53 = vadd.f32 %v1439_v23, %v3352_v12  ;;  %v1106_v12 = vmul.f32 %v3310_v16, %v3413_v17 }
 0x225   : > { %1636 = vmatmul.f32.gmra.mxu2 %v1598_v60  ;;  %v1858_v60 = vadd.f32 %v2484_v45, %v2468_v57  ;;  %v2488_v45 = vsel %vm1685_vm9, 1.0, %v2989_v33  ;;  %v2472_v57 = vsel %vm1280_vm11, 1.0, %v2989_v33  ;;  %vm1691_vm0 = vcmp.gt.f32.partialorder %v3494_v20, 0.0 }
 0x226   : > { %v1862_v52 = vadd.f32 %v2488_v45, %v2472_v57  ;;  %v1122_v17 = vadd.f32 %v1106_v12, %v3283_v63  ;;  %v2477_v63 = vsel %vm1285_vm14, 1.0, %v2989_v33  ;;  %vm1286_vm1 = vcmp.gt.f32.partialorder %v3302_v14, 0.0  ;;  %v1850_v12 = vld [vmem:[#allocation3 + $0x68] sm:$0xff] }
 0x227   : > { %1592 = vperm.xlu1 %2632, %v2700_v3   ;;  %v2494_v48 = vsel %vm1691_vm0, 1.0, %v2989_v33 }
 0x228   : > { %1429 = vperm.xlu2 %2633, %v3494_v20  }
 0x229   : > { %v1248_v10 = vpop.permute.xlu0 %1247  ;;  %v1218_v6 = vpop.permute.xlu1 %1217 }
 0x22a   : > { %v3518_v15 = vmul.f32 %v1248_v10, %v1125_v4  ;;  %v3520_v28 = vpop.permute.xlu2 %1379  ;;  %v1263_v49 = vmul.f32 %v1218_v6, %v1119_v54  ;;  %v2487_v10 = vsel %vm1684_vm3, 1.0, %v2989_v33  ;;  %v1264_v6 = vmul.f32 %v3490_v40, %v1120_v35 }
 0x22b   : > { %v1121_v40 = vadd.f32 %v1105_v50, %v3276_v58  ;;  %v2474_v58 = vsel %vm1282_vm10, 1.0, %v2989_v33  ;;  %v1266_v35 = vmul.f32 %v3497_v25, %v1122_v17 }
 0x22c   : > { %1777 = vmatmul.f32.gmra.mxu3 %v1262_v51  ;;  %v2471_v51 = vsel %vm1279_vm6, 1.0, %v2989_v33 }
 0x22d   : > { %v1861_v31 = vadd.f32 %v2487_v10, %v2471_v51 }
 0x22f   : > { %1889 = vrot.lane.b32.xlu1 %v1855_v27, %s2990_s6 }
 0x230   : > { %1885 = vrot.lane.b32.xlu2 %v1853_v36, %s2990_s6 }
 0x231   : > { %v1253_v44 = vpop.permute.xlu0 %1252  ;;  %v1228_v30 = vpop.permute.xlu1 %1227 }
 0x232   : > { %v3538_v38 = vmul.f32 %v1253_v44, %v1126_v26  ;;  %v3540_v41 = vpop.permute.xlu2 %1384  ;;  %v2490_v26 = vsel %vm1687_vm8, 1.0, %v2989_v33  ;;  %v1265_v54 = vmul.f32 %v1228_v30, %v1121_v40  ;;  %v1844_v30 = vld [vmem:[#allocation3 + $0x38] sm:$0xff] }
 0x233   : > { %v1864_v55 = vadd.f32 %v2490_v26, %v2474_v58  ;;  %v1441_v11 = vmul.f32 %v3471_v18, %v3540_v41 }
 0x234   : > { %1780 = vmatmul.f32.gmra.mxu3 %v1263_v49  ;;  %v1440_v49 = vmul.f32 %v3471_v18, %v3520_v28 }
 0x235   : > { %v1457_v51 = vadd.f32 %v1441_v11, %v3367_v29 }
 0x236   : > { %v1456_v0 = vadd.f32 %v1440_v49, %v3361_v21  ;;  %v1107_v21 = vmul.f32 %v3310_v16, %v3450_v39  ;;  %v1108_v49 = vmul.f32 %v3310_v16, %v3430_v37 }
 0x237   : > { %1895 = vrot.lane.b32.xlu1 %v1858_v60, %s2990_s6 }
 0x238   : > { %1891 = vrot.lane.b32.xlu2 %v1856_v13, %s2990_s6  ;;  %v1123_v25 = vadd.f32 %v1107_v21, %v3290_v5  ;;  %v2478_v5 = vsel %vm1286_vm1, 1.0, %v2989_v33 }
 0x239   : > { %v1888_v3 = vpop.permute.xlu0 %1887  ;;  %v3555_v61 = vpop.permute.xlu1 %1237  ;;  %v1868_v29 = vadd.f32 %v2494_v48, %v2478_v5 }
 0x23a   : > { %v1934_v4 = vadd.f32 %v1888_v3, %v1838_v1  ;;  %v3557_v7 = vpop.permute.xlu2 %1547  ;;  %v2493_v1 = vsel %vm1690_vm12, 1.0, %v2989_v33  ;;  %v1267_v50 = vmul.f32 %v3555_v61, %v1123_v25 }
 0x23b   : > { %v1867_v10 = vadd.f32 %v2493_v1, %v2477_v63  ;;  %v1601_v23 = vmul.f32 %v3557_v7, %v1457_v51 }
 0x23c   : > { %1951 = vst.msk [vmem:[#allocation3 + $0x8] sm:$0xff] %vm1949_vm5, %v1934_v4  ;;  %1783 = vmatmul.f32.gmra.mxu3 %v1264_v6  ;;  %v2491_v4 = vsel %vm1688_vm13, 1.0, %v2989_v33  ;;  %v2475_v6 = vsel %vm1283_vm15, 1.0, %v2989_v33 }
 0x23d   : > { %v1865_v19 = vadd.f32 %v2491_v4, %v2475_v6  ;;  %v1757_v4 = vpop.f32.mrf.mxu3 }
 0x23f   : > { %1901 = vrot.lane.b32.xlu1 %v1861_v31, %s2990_s6  ;;  %v1847_v31 = vld [vmem:[#allocation3 + $0x50] sm:$0xff] }
 0x240   : > { %1897 = vrot.lane.b32.xlu2 %v1859_v32, %s2990_s6 }
 0x241   : > { %v1894_v27 = vpop.permute.xlu0 %1893  ;;  %v1538_v24 = vpop.permute.xlu1 %1537 }
 0x242   : > { %v1937_v34 = vadd.f32 %v1894_v27, %v1841_v46  ;;  %v3577_v36 = vpop.permute.xlu2 %1394  ;;  %v1599_v44 = vmul.f32 %v1538_v24, %v1455_v53 }
 0x243   : > { %v1443_v27 = vmul.f32 %v3471_v18, %v3577_v36 }
 0x244   : > { %1954 = vst.msk [vmem:[#allocation3 + $0x20] sm:$0xff] %vm1949_vm5, %v1937_v34  ;;  %1639 = vmatmul.f32.gmra.mxu2 %v1599_v44  ;;  %1786 = vmatmul.f32.gmra.mxu3 %v1265_v54 }
 0x245   : > { %v1459_v24 = vadd.f32 %v1443_v27, %v3389_v59 }
 0x247   : > { %1907 = vrot.lane.b32.xlu1 %v1864_v55, %s2990_s6 }
 0x248   : > { %1903 = vrot.lane.b32.xlu2 %v1862_v52, %s2990_s6  ;;  %v1124_v52 = vadd.f32 %v1108_v49, %v3296_v9  ;;  %v1727_v49 = vld [vmem:[#allocation2 + $0x18] sm:$0xff] }
 0x249   : > { %v1900_v28 = vpop.permute.xlu0 %1899  ;;  %v1543_v60 = vpop.permute.xlu1 %1542 }
 0x24a   : > { %v1940_v42 = vadd.f32 %v1900_v28, %v1844_v30  ;;  %v1558_v13 = vpop.permute.xlu2 %1557  ;;  %v1600_v3 = vmul.f32 %v1543_v60, %v1456_v0 }
 0x24b   : > { %v1603_v33 = vmul.f32 %v1558_v13, %v1459_v24 }
 0x24c   : > { %1957 = vst.msk [vmem:[#allocation3 + $0x38] sm:$0xff] %vm1949_vm5, %v1940_v42  ;;  %1642 = vmatmul.f32.gmra.mxu2 %v1600_v3  ;;  %1789 = vmatmul.f32.gmra.mxu3 %v1266_v35 }
 0x24f   : > { %1913 = vrot.lane.b32.xlu1 %v1867_v10, %s2990_s6 }
 0x250   : > { %1909 = vrot.lane.b32.xlu2 %v1865_v19, %s2990_s6 }
 0x251   : > { %v1390_v39 = vpop.permute.xlu1 %1389 }
 0x252   : > { %v1405_v41 = vpop.permute.xlu2 %1404  ;;  %v1442_v32 = vmul.f32 %v3471_v18, %v1390_v39  ;;  %v1840_v39 = vld [vmem:[#allocation3 + $0x18] sm:$0xff] }
 0x253   : > { %v1445_v36 = vmul.f32 %v3471_v18, %v1405_v41 }
 0x254   : > { %1645 = vmatmul.f32.gmra.mxu2 %v1601_v23  ;;  %1792 = vmatmul.f32.gmra.mxu3 %v1267_v50  ;;  %v1458_v14 = vadd.f32 %v1442_v32, %v3375_v43  ;;  %v1725_v32 = vld [vmem:[#allocation2] sm:$0xff] }
 0x255   : > { %v1906_v46 = vpop.permute.xlu0 %1905  ;;  %v1461_v57 = vadd.f32 %v1445_v36, %v3420_v22  ;;  %v1842_v36 = vld [vmem:[#allocation3 + $0x28] sm:$0xff] }
 0x256   : > { %v1943_v40 = vadd.f32 %v1906_v46, %v1847_v31 }
 0x258   : > { %1960 = vst.msk [vmem:[#allocation3 + $0x50] sm:$0xff] %vm1949_vm5, %v1943_v40  ;;  %1915 = vrot.lane.b32.xlu2 %v1868_v29, %s2990_s6  ;;  %v1843_v29 = vld [vmem:[#allocation3 + $0x30] sm:$0xff] }
 0x259   : > { %v1553_v61 = vpop.permute.xlu1 %1552 }
 0x25a   : > { %v1568_v7 = vpop.permute.xlu2 %1567  ;;  %v1602_v53 = vmul.f32 %v1553_v61, %v1458_v14 }
 0x25b   : > { %v1605_v17 = vmul.f32 %v1568_v7, %v1461_v57 }
 0x25c   : > { %1648 = vmatmul.f32.gmra.mxu2 %v1602_v53 }
 0x261   : > { %v1400_v34 = vpop.permute.xlu1 %1399 }
 0x262   : > { %v1415_v26 = vpop.permute.xlu2 %1414  ;;  %v1444_v54 = vmul.f32 %v3471_v18, %v1400_v34  ;;  %v1726_v34 = vld [vmem:[#allocation2 + $0x58] sm:$0xff] }
 0x263   : > { %v1447_v13 = vmul.f32 %v3471_v18, %v1415_v26 }
 0x264   : > { %1651 = vmatmul.f32.gmra.mxu2 %v1603_v33  ;;  %v1460_v44 = vadd.f32 %v1444_v54, %v3405_v8  ;;  %v1839_v33 = vld [vmem:[#allocation3 + $0x10] sm:$0xff]  ;;  %v1846_v54 = vld [vmem:[#allocation3 + $0x48] sm:$0xff] }
 0x265   : > { %v1463_v9 = vadd.f32 %v1447_v13, %v3447_v56 }
 0x269   : > { %v1563_v45 = vpop.permute.xlu1 %1562 }
 0x26a   : > { %v1578_v58 = vpop.permute.xlu2 %1577  ;;  %v1604_v43 = vmul.f32 %v1563_v45, %v1460_v44 }
 0x26b   : > { %v1607_v35 = vmul.f32 %v1578_v58, %v1463_v9  ;;  %v1848_v9 = vld [vmem:[#allocation3 + $0x58] sm:$0xff] }
 0x26c   : > { %1654 = vmatmul.f32.gmra.mxu2 %v1604_v43 }
 0x26d   : > { %v1912_v55 = vpop.permute.xlu0 %1911 }
 0x26e   : > { %v1946_v59 = vadd.f32 %v1912_v55, %v1850_v12  ;;  %v1849_v55 = vld [vmem:[#allocation3 + $0x60] sm:$0xff] }
 0x270   : > { %1963 = vst.msk [vmem:[#allocation3 + $0x68] sm:$0xff] %vm1949_vm5, %v1946_v59 }
 0x271   : > { %v1410_v30 = vpop.permute.xlu1 %1409 }
 0x272   : > { %v1243_v8 = vpop.permute.xlu2 %1242  ;;  %v1446_v28 = vmul.f32 %v3471_v18, %v1410_v30 }
 0x273   : > { %v1268_v0 = vmul.f32 %v1243_v8, %v1124_v52 }
 0x274   : > { %1657 = vmatmul.f32.gmra.mxu2 %v1605_v17  ;;  %v1462_v16 = vadd.f32 %v1446_v28, %v3437_v47  ;;  %v1837_v47 = vld [vmem:[#allocation3] sm:$0xff]  ;;  %v1852_v28 = vld [vmem:[#allocation3 + $0x78] sm:$0xff] }
 0x275   : > { %1795 = vmatmul.f32.gmra.mxu3 %v1268_v0  ;;  %v1845_v0 = vld [vmem:[#allocation3 + $0x40] sm:$0xff] }
 0x279   : > { %v1573_v37 = vpop.permute.xlu1 %1572 }
 0x27a   : > { %v1425_v60 = vpop.permute.xlu2 %1424  ;;  %v1606_v42 = vmul.f32 %v1573_v37, %v1462_v16 }
 0x27b   : > { %v1449_v56 = vmul.f32 %v3471_v18, %v1425_v60 }
 0x27c   : > { %1660 = vmatmul.f32.gmra.mxu2 %v1606_v42 }
 0x27d   : > { %1798 = vmatmul.f32.gmra.mxu3 %v3518_v15  ;;  %v1724_v15 = vld [vmem:[#allocation2 + $0x30] sm:$0xff]  ;;  %v1465_v41 = vadd.f32 %v1449_v56, %v3485_v62 }
 0x281   : > { %v1420_v22 = vpop.permute.xlu1 %1419 }
 0x282   : > { %v1430_v1 = vpop.permute.xlu2 %1429  ;;  %v1448_v3 = vmul.f32 %v3471_v18, %v1420_v22 }
 0x283   : > { %v1450_v5 = vmul.f32 %v3471_v18, %v1430_v1 }
 0x284   : > { %1663 = vmatmul.f32.gmra.mxu2 %v1607_v35  ;;  %v1464_v63 = vadd.f32 %v1448_v3, %v3455_v2  ;;  %v1851_v3 = vld [vmem:[#allocation3 + $0x70] sm:$0xff] }
 0x285   : > { %1801 = vmatmul.f32.gmra.mxu3 %v3538_v38  ;;  %v1760_v38 = vpop.f32.mrf.mxu3  ;;  %v1466_v14 = vadd.f32 %v1450_v5, %v3494_v20 }
 0x289   : > { %v1583_v21 = vpop.permute.xlu1 %1582 }
 0x28a   : > { %v1886_v11 = vpop.permute.xlu2 %1885  ;;  %v1608_v10 = vmul.f32 %v1583_v21, %v1464_v63 }
 0x28b   : > { %v1933_v6 = vadd.f32 %v1886_v11, %v1837_v47  ;;  %v1628_v19 = vpop.f32.mrf.mxu2  ;;  %v1728_v11 = vld [vmem:[#allocation2 + $0x50] sm:$0xff] }
 0x28c   : > { %v1758_v25 = vadd.f32 %v1757_v4, %v1628_v19  ;;  %1666 = vmatmul.f32.gmra.mxu2 %v1608_v10 }
 0x28d   : > { %1950 = vst.msk [vmem:[#allocation3] sm:$0xff] %vm1949_vm5, %v1933_v6  ;;  %v1763_v62 = vpop.f32.mrf.mxu3 }
 0x28e   : > { %v1805_v51 = vadd.f32 %v1758_v25, %v1724_v15  ;;  %v1729_v15 = vld [vmem:[#allocation2 + $0x68] sm:$0xff] }
 0x290   : > { %1821 = vst [vmem:[#allocation2 + $0x30] sm:$0xff] %v1805_v51 }
 0x291   : > { %v1588_v50 = vpop.permute.xlu1 %1587 }
 0x292   : > { %v1892_v2 = vpop.permute.xlu2 %1891  ;;  %v1609_v23 = vmul.f32 %v1588_v50, %v1465_v41 }
 0x293   : > { %v1936_v31 = vadd.f32 %v1892_v2, %v1840_v39  ;;  %v1631_v48 = vpop.f32.mrf.mxu2 }
 0x294   : > { %v1761_v46 = vadd.f32 %v1760_v38, %v1631_v48  ;;  %1669 = vmatmul.f32.gmra.mxu2 %v1609_v23  ;;  %v1730_v38 = vld [vmem:[#allocation2 + $0x8] sm:$0xff] }
 0x295   : > { %1953 = vst.msk [vmem:[#allocation3 + $0x18] sm:$0xff] %vm1949_vm5, %v1936_v31  ;;  %v1766_v43 = vpop.f32.mrf.mxu3  ;;  %v1731_v31 = vld [vmem:[#allocation2 + $0x48] sm:$0xff] }
 0x296   : > { %v1806_v40 = vadd.f32 %v1761_v46, %v1725_v32 }
 0x298   : > { %1822 = vst [vmem:[#allocation2] sm:$0xff] %v1806_v40  ;;  %v1732_v40 = vld [vmem:[#allocation2 + $0x40] sm:$0xff] }
 0x299   : > { %v1593_v61 = vpop.permute.xlu1 %1592 }
 0x29a   : > { %v1898_v7 = vpop.permute.xlu2 %1897  ;;  %v1610_v53 = vmul.f32 %v1593_v61, %v1466_v14 }
 0x29b   : > { %v1939_v27 = vadd.f32 %v1898_v7, %v1843_v29  ;;  %v1634_v24 = vpop.f32.mrf.mxu2 }
 0x29c   : > { %v1764_v26 = vadd.f32 %v1763_v62, %v1634_v24  ;;  %1672 = vmatmul.f32.gmra.mxu2 %v1610_v53  ;;  %v1733_v62 = vld [vmem:[#allocation2 + $0x20] sm:$0xff] }
 0x29d   : > { %1956 = vst.msk [vmem:[#allocation3 + $0x30] sm:$0xff] %vm1949_vm5, %v1939_v27  ;;  %v1769_v13 = vpop.f32.mrf.mxu3 }
 0x29e   : > { %v1807_v18 = vadd.f32 %v1764_v26, %v1726_v34  ;;  %v1734_v34 = vld [vmem:[#allocation2 + $0x10] sm:$0xff] }
 0x2a0   : > { %1823 = vst [vmem:[#allocation2 + $0x58] sm:$0xff] %v1807_v18 }
 0x2a1   : > { %v1890_v44 = vpop.permute.xlu1 %1889 }
 0x2a2   : > { %v1904_v45 = vpop.permute.xlu2 %1903  ;;  %v1935_v58 = vadd.f32 %v1890_v44, %v1839_v33  ;;  %v1735_v44 = vld [vmem:[#allocation2 + $0x38] sm:$0xff] }
 0x2a3   : > { %v1942_v20 = vadd.f32 %v1904_v45, %v1846_v54 }
 0x2a4   : > { %1952 = vst.msk [vmem:[#allocation3 + $0x10] sm:$0xff] %vm1949_vm5, %v1935_v58 }
 0x2a5   : > { %1959 = vst.msk [vmem:[#allocation3 + $0x48] sm:$0xff] %vm1949_vm5, %v1942_v20  ;;  %v1772_v35 = vpop.f32.mrf.mxu3 }
 0x2a8   : > { %v1637_v12 = vpop.f32.mrf.mxu2 }
 0x2a9   : > { %v1767_v59 = vadd.f32 %v1766_v43, %v1637_v12  ;;  %v1896_v57 = vpop.permute.xlu1 %1895  ;;  %v1736_v12 = vld [vmem:[#allocation2 + $0x60] sm:$0xff] }
 0x2aa   : > { %v1910_v52 = vpop.permute.xlu2 %1909  ;;  %v1938_v8 = vadd.f32 %v1896_v57, %v1842_v36  ;;  %v1737_v57 = vld [vmem:[#allocation2 + $0x70] sm:$0xff] }
 0x2ab   : > { %v1808_v30 = vadd.f32 %v1767_v59, %v1727_v49  ;;  %v1945_v17 = vadd.f32 %v1910_v52, %v1849_v55 }
 0x2ac   : > { %1955 = vst.msk [vmem:[#allocation3 + $0x28] sm:$0xff] %vm1949_vm5, %v1938_v8 }
 0x2ad   : > { %1824 = vst [vmem:[#allocation2 + $0x18] sm:$0xff] %v1808_v30  ;;  %v1775_v63 = vpop.f32.mrf.mxu3 }
 0x2ae   : > { %1962 = vst.msk [vmem:[#allocation3 + $0x60] sm:$0xff] %vm1949_vm5, %v1945_v17 }
 0x2b1   : > { %v1902_v16 = vpop.permute.xlu1 %1901 }
 0x2b2   : > { %v1916_v37 = vpop.permute.xlu2 %1915  ;;  %v1941_v60 = vadd.f32 %v1902_v16, %v1845_v0  ;;  %v1738_v0 = vld [vmem:[#allocation2 + $0x78] sm:$0xff] }
 0x2b3   : > { %v1948_v42 = vadd.f32 %v1916_v37, %v1852_v28 }
 0x2b4   : > { %1958 = vst.msk [vmem:[#allocation3 + $0x40] sm:$0xff] %vm1949_vm5, %v1941_v60 }
 0x2b5   : > { %1965 = vst.msk [vmem:[#allocation3 + $0x78] sm:$0xff] %vm1949_vm5, %v1948_v42  ;;  %v1778_v56 = vpop.f32.mrf.mxu3  ;;  %v1739_v42 = vld [vmem:[#allocation2 + $0x28] sm:$0xff] }
 0x2b9   : > { %v1908_v22 = vpop.permute.xlu1 %1907 }
 0x2ba   : > { %v1944_v1 = vadd.f32 %v1908_v22, %v1848_v9  ;;  %v1975_v22 = vld [vmem:[#allocation3 + $0x20] sm:$0xff] (%p1966_p1) }
 0x2bb   : > { %vm2007_vm2 = vcmp.eq.f32.partialorder (%p1966_p1), %v1975_v22, 0.0 }
 0x2bc   : > { %1961 = vst.msk [vmem:[#allocation3 + $0x58] sm:$0xff] %vm1949_vm5, %v1944_v1  ;;  %v1973_v1 = vld [vmem:[#allocation3 + $0x10] sm:$0xff] (%p1966_p1) }
 0x2bd   : > { %v1781_v2 = vpop.f32.mrf.mxu3  ;;  %vm2005_vm3 = vcmp.eq.f32.partialorder (%p1966_p1), %v1973_v1, 0.0 }
 0x2c1   : > { %v1914_v4 = vpop.permute.xlu1 %1913 }
 0x2c2   : > { %v1947_v47 = vadd.f32 %v1914_v4, %v1851_v3  ;;  %v2991_v3 = vmov (%p1966_p1), 0   ;;  %v1976_v4 = vld [vmem:[#allocation3 + $0x28] sm:$0xff] (%p1966_p1) }
 0x2c3   : > { %2703 = vset.pattern.permute.xlu2 (%p1966_p1), %v2991_v3  ;;  %2702 = vset.pattern.permute.xlu1 (%p1966_p1), %v2991_v3 }
 0x2c4   : > { %1964 = vst.msk [vmem:[#allocation3 + $0x70] sm:$0xff] %vm1949_vm5, %v1947_v47  ;;  %v1974_v47 = vld [vmem:[#allocation3 + $0x18] sm:$0xff] (%p1966_p1)  ;;  %2701 = vset.pattern.permute.xlu0 (%p1966_p1), %v2991_v3  ;;  %vm2008_vm5 = vcmp.eq.f32.partialorder (%p1966_p1), %v1976_v4, 0.0 }
 0x2c5   : > { %v1784_v46 = vpop.f32.mrf.mxu3  ;;  %vm2006_vm6 = vcmp.eq.f32.partialorder (%p1966_p1), %v1974_v47, 0.0 }
 0x2c7   : > { %v1640_v21 = vpop.f32.mrf.mxu2 }
 0x2c8   : > { %v1770_v10 = vadd.f32 %v1769_v13, %v1640_v21  ;;  %v2021_v21 = vsel (%p1966_p1), %vm2005_vm3, 1.0, %v1973_v1 }
 0x2ca   : > { %v1809_v6 = vadd.f32 %v1770_v10, %v1728_v11  ;;  %v1972_v10 = vld [vmem:[#allocation3 + $0x8] sm:$0xff] (%p1966_p1) }
 0x2cb   : > { %vm2004_vm7 = vcmp.eq.f32.partialorder (%p1966_p1), %v1972_v10, 0.0 }
 0x2cc   : > { %1825 = vst [vmem:[#allocation2 + $0x50] sm:$0xff] %v1809_v6  ;;  %v2024_v6 = vsel (%p1966_p1), %vm2008_vm5, 1.0, %v1976_v4  ;;  %v1990_v4 = vld [vmem:[#allocation2 + $0x18] sm:$0xff] (%p1966_p1) }
 0x2cd   : > { %v1787_v61 = vpop.f32.mrf.mxu3 }
 0x2cf   : > { %v1643_v19 = vpop.f32.mrf.mxu2 }
 0x2d0   : > { %v1773_v25 = vadd.f32 %v1772_v35, %v1643_v19  ;;  %v1971_v35 = vld [vmem:[#allocation3] sm:$0xff] (%p1966_p1)  ;;  %v2022_v19 = vsel (%p1966_p1), %vm2006_vm6, 1.0, %v1974_v47 }
 0x2d1   : > { %vm2003_vm4 = vcmp.eq.f32.partialorder (%p1966_p1), %v1971_v35, 0.0 }
 0x2d2   : > { %v1810_v51 = vadd.f32 %v1773_v25, %v1729_v15  ;;  %v2019_v11 = vsel (%p1966_p1), %vm2003_vm4, 1.0, %v1971_v35  ;;  %v2020_v15 = vsel (%p1966_p1), %vm2004_vm7, 1.0, %v1972_v10  ;;  %v1979_v25 = vld [vmem:[#allocation3 + $0x40] sm:$0xff] (%p1966_p1) }
 0x2d3   : > { %vm2011_vm8 = vcmp.eq.f32.partialorder (%p1966_p1), %v1979_v25, 0.0 }
 0x2d4   : > { %1826 = vst [vmem:[#allocation2 + $0x68] sm:$0xff] %v1810_v51  ;;  %v1978_v51 = vld [vmem:[#allocation3 + $0x38] sm:$0xff] (%p1966_p1) }
 0x2d5   : > { %v1790_v18 = vpop.f32.mrf.mxu3  ;;  %vm2010_vm9 = vcmp.eq.f32.partialorder (%p1966_p1), %v1978_v51, 0.0 }
 0x2d7   : > { %v1646_v39 = vpop.f32.mrf.mxu2 }
 0x2d8   : > { %v1776_v41 = vadd.f32 %v1775_v63, %v1646_v39  ;;  %v2023_v63 = vsel (%p1966_p1), %vm2007_vm2, 1.0, %v1975_v22 }
 0x2d9   : > { %2704 = vrcp.f32 (%p1966_p1), %v2023_v63  ;;  %v1988_v63 = vld [vmem:[#allocation2] sm:$0xff] (%p1966_p1) }
 0x2da   : > { %v1811_v50 = vadd.f32 %v1776_v41, %v1730_v38  ;;  %2706 = vrcp.f32 (%p1966_p1), %v2021_v21  ;;  %v1977_v38 = vld [vmem:[#allocation3 + $0x30] sm:$0xff] (%p1966_p1) }
 0x2db   : > { %2708 = vrcp.f32 (%p1966_p1), %v2019_v11  ;;  %vm2009_vm10 = vcmp.eq.f32.partialorder (%p1966_p1), %v1977_v38, 0.0 }
 0x2dc   : > { %1827 = vst [vmem:[#allocation2 + $0x8] sm:$0xff] %v1811_v50  ;;  %2710 = vrcp.f32 (%p1966_p1), %v2024_v6  ;;  %v2027_v50 = vsel (%p1966_p1), %vm2011_vm8, 1.0, %v1979_v25 }
 0x2dd   : > { %v1793_v20 = vpop.f32.mrf.mxu3  ;;  %2712 = vrcp.f32 (%p1966_p1), %v2022_v19 }
 0x2de   : > { %2714 = vrcp.f32 (%p1966_p1), %v2020_v15 }
 0x2df   : > { %v1649_v23 = vpop.f32.mrf.mxu2  ;;  %2716 = vrcp.f32 (%p1966_p1), %v2027_v50 }
 0x2e0   : > { %v1779_v48 = vadd.f32 %v1778_v56, %v1649_v23  ;;  %v2705_v56 = vpop.eup (%p1966_p1), %2704  ;;  %v2026_v23 = vsel (%p1966_p1), %vm2010_vm9, 1.0, %v1978_v51 }
 0x2e1   : > { %v2707_v39 = vpop.eup (%p1966_p1), %2706  ;;  %2073 = vperm.xlu2 (%p1966_p1), %2703, %v2705_v56   ;;  %2718 = vrcp.f32 (%p1966_p1), %v2026_v23 }
 0x2e2   : > { %v1812_v32 = vadd.f32 %v1779_v48, %v1731_v31  ;;  %v2709_v41 = vpop.eup (%p1966_p1), %2708  ;;  %2063 = vperm.xlu1 (%p1966_p1), %2702, %v2707_v39   ;;  %v2025_v48 = vsel (%p1966_p1), %vm2009_vm10, 1.0, %v1977_v38 }
 0x2e3   : > { %2053 = vperm.xlu0 (%p1966_p1), %2701, %v2709_v41   ;;  %2720 = vrcp.f32 (%p1966_p1), %v2025_v48  ;;  %v1993_v25 = vld [vmem:[#allocation2 + $0x8] sm:$0xff] (%p1966_p1) }
 0x2e4   : > { %1828 = vst [vmem:[#allocation2 + $0x48] sm:$0xff] %v1812_v32  ;;  %v1982_v32 = vld [vmem:[#allocation3 + $0x58] sm:$0xff] (%p1966_p1) }
 0x2e5   : > { %vm2014_vm11 = vcmp.eq.f32.partialorder (%p1966_p1), %v1982_v32, 0.0 }
 0x2e7   : > { %v1652_v5 = vpop.f32.mrf.mxu2 }
 0x2e8   : > { %v1782_v29 = vadd.f32 %v1781_v2, %v1652_v5  ;;  %v2711_v2 = vpop.eup (%p1966_p1), %2710  ;;  %v1981_v5 = vld [vmem:[#allocation3 + $0x50] sm:$0xff] (%p1966_p1) }
 0x2e9   : > { %v2713_v31 = vpop.eup (%p1966_p1), %2712  ;;  %2078 = vperm.xlu2 (%p1966_p1), %2703, %v2711_v2   ;;  %vm2013_vm12 = vcmp.eq.f32.partialorder (%p1966_p1), %v1981_v5, 0.0 }
 0x2ea   : > { %v1813_v14 = vadd.f32 %v1782_v29, %v1732_v40  ;;  %v1980_v40 = vld [vmem:[#allocation3 + $0x48] sm:$0xff] (%p1966_p1)  ;;  %2068 = vperm.xlu1 (%p1966_p1), %2702, %v2713_v31   ;;  %v2030_v29 = vsel (%p1966_p1), %vm2014_vm11, 1.0, %v1982_v32 }
 0x2eb   : > { %vm2012_vm13 = vcmp.eq.f32.partialorder (%p1966_p1), %v1980_v40, 0.0  ;;  %2722 = vrcp.f32 (%p1966_p1), %v2030_v29  ;;  %v1994_v15 = vld [vmem:[#allocation2 + $0x48] sm:$0xff] (%p1966_p1) }
 0x2ec   : > { %1829 = vst [vmem:[#allocation2 + $0x40] sm:$0xff] %v1813_v14 }
 0x2ef   : > { %v1655_v7 = vpop.f32.mrf.mxu2 }
 0x2f0   : > { %v1785_v53 = vadd.f32 %v1784_v46, %v1655_v7  ;;  %v2715_v46 = vpop.eup (%p1966_p1), %2714 }
 0x2f1   : > { %2058 = vperm.xlu0 (%p1966_p1), %2701, %v2715_v46   ;;  %v2717_v14 = vpop.eup (%p1966_p1), %2716 }
 0x2f2   : > { %v1814_v27 = vadd.f32 %v1785_v53, %v1733_v62  ;;  %v2719_v7 = vpop.eup (%p1966_p1), %2718  ;;  %v2028_v62 = vsel (%p1966_p1), %vm2012_vm13, 1.0, %v1980_v40  ;;  %v1985_v53 = vld [vmem:[#allocation3 + $0x70] sm:$0xff] (%p1966_p1)  ;;  %2093 = vperm.xlu2 (%p1966_p1), %2703, %v2717_v14  }
 0x2f3   : > { %2088 = vperm.xlu1 (%p1966_p1), %2702, %v2719_v7   ;;  %vm2017_vm14 = vcmp.eq.f32.partialorder (%p1966_p1), %v1985_v53, 0.0 }
 0x2f4   : > { %1830 = vst [vmem:[#allocation2 + $0x20] sm:$0xff] %v1814_v27  ;;  %v2721_v27 = vpop.eup (%p1966_p1), %2720 }
 0x2f7   : > { %v1658_v24 = vpop.f32.mrf.mxu2 }
 0x2f8   : > { %v1788_v26 = vadd.f32 %v1787_v61, %v1658_v24  ;;  %v1796_v55 = vpop.f32.mrf.mxu3  ;;  %v2029_v61 = vsel (%p1966_p1), %vm2013_vm12, 1.0, %v1981_v5  ;;  %v1984_v24 = vld [vmem:[#allocation3 + $0x68] sm:$0xff] (%p1966_p1) }
 0x2f9   : > { %2724 = vrcp.f32 (%p1966_p1), %v2029_v61  ;;  %2083 = vperm.xlu0 (%p1966_p1), %2701, %v2721_v27   ;;  %vm2016_vm15 = vcmp.eq.f32.partialorder (%p1966_p1), %v1984_v24, 0.0 }
 0x2fa   : > { %v1815_v33 = vadd.f32 %v1788_v26, %v1734_v34  ;;  %v1983_v34 = vld [vmem:[#allocation3 + $0x60] sm:$0xff] (%p1966_p1)  ;;  %2726 = vrcp.f32 (%p1966_p1), %v2028_v62  ;;  %v2033_v26 = vsel (%p1966_p1), %vm2017_vm14, 1.0, %v1985_v53 }
 0x2fb   : > { %vm2015_vm0 = vcmp.eq.f32.partialorder (%p1966_p1), %v1983_v34, 0.0  ;;  %2728 = vrcp.f32 (%p1966_p1), %v2033_v26  ;;  %v1996_v50 = vld [vmem:[#allocation2 + $0x20] sm:$0xff] (%p1966_p1) }
 0x2fc   : > { %1831 = vst [vmem:[#allocation2 + $0x10] sm:$0xff] %v1815_v33  ;;  %v2032_v33 = vsel (%p1966_p1), %vm2016_vm15, 1.0, %v1984_v24 }
 0x2fd   : > { %2730 = vrcp.f32 (%p1966_p1), %v2032_v33 }
 0x2ff   : > { %v1661_v54 = vpop.f32.mrf.mxu2 }
 0x300   : > { %v1791_v45 = vadd.f32 %v1790_v18, %v1661_v54  ;;  %v1799_v8 = vpop.f32.mrf.mxu3  ;;  %v2723_v18 = vpop.eup (%p1966_p1), %2722 }
 0x301   : > { %v2725_v54 = vpop.eup (%p1966_p1), %2724  ;;  %2108 = vperm.xlu2 (%p1966_p1), %2703, %v2723_v18  }
 0x302   : > { %v1816_v58 = vadd.f32 %v1791_v45, %v1735_v44  ;;  %v2031_v44 = vsel (%p1966_p1), %vm2015_vm0, 1.0, %v1983_v34  ;;  %v2727_v45 = vpop.eup (%p1966_p1), %2726  ;;  %2103 = vperm.xlu1 (%p1966_p1), %2702, %v2725_v54  }
 0x303   : > { %2732 = vrcp.f32 (%p1966_p1), %v2031_v44  ;;  %2098 = vperm.xlu0 (%p1966_p1), %2701, %v2727_v45   ;;  %v1997_v41 = vld [vmem:[#allocation2 + $0x10] sm:$0xff] (%p1966_p1) }
 0x304   : > { %1832 = vst [vmem:[#allocation2 + $0x38] sm:$0xff] %v1816_v58  ;;  %v1986_v58 = vld [vmem:[#allocation3 + $0x78] sm:$0xff] (%p1966_p1) }
 0x305   : > { %vm2018_vm1 = vcmp.eq.f32.partialorder (%p1966_p1), %v1986_v58, 0.0 }
 0x307   : > { %v1664_v43 = vpop.f32.mrf.mxu2 }
 0x308   : > { %v1794_v49 = vadd.f32 %v1793_v20, %v1664_v43  ;;  %v1802_v37 = vpop.f32.mrf.mxu3  ;;  %v2729_v20 = vpop.eup (%p1966_p1), %2728 }
 0x309   : > { %v2731_v43 = vpop.eup (%p1966_p1), %2730  ;;  %2123 = vperm.xlu2 (%p1966_p1), %2703, %v2729_v20  }
 0x30a   : > { %v1817_v36 = vadd.f32 %v1794_v49, %v1736_v12  ;;  %v2034_v12 = vsel (%p1966_p1), %vm2018_vm1, 1.0, %v1986_v58  ;;  %v2733_v49 = vpop.eup (%p1966_p1), %2732  ;;  %2118 = vperm.xlu1 (%p1966_p1), %2702, %v2731_v43  }
 0x30b   : > { %2734 = vrcp.f32 (%p1966_p1), %v2034_v12  ;;  %2113 = vperm.xlu0 (%p1966_p1), %2701, %v2733_v49  }
 0x30c   : > { %1833 = vst [vmem:[#allocation2 + $0x60] sm:$0xff] %v1817_v36 }
 0x30f   : > { %v1667_v59 = vpop.f32.mrf.mxu2 }
 0x310   : > { %v1797_v52 = vadd.f32 %v1796_v55, %v1667_v59  ;;  %v1991_v55 = vld [vmem:[#allocation2 + $0x50] sm:$0xff] (%p1966_p1) }
 0x311   : > { %v2735_v36 = vpop.eup (%p1966_p1), %2734 }
 0x312   : > { %v1818_v30 = vadd.f32 %v1797_v52, %v1737_v57  ;;  %v1992_v52 = vld [vmem:[#allocation2 + $0x68] sm:$0xff] (%p1966_p1) }
 0x313   : > { %2128 = vperm.xlu0 (%p1966_p1), %2701, %v2735_v36   ;;  %v1999_v46 = vld [vmem:[#allocation2 + $0x60] sm:$0xff] (%p1966_p1) }
 0x314   : > { %1834 = vst [vmem:[#allocation2 + $0x70] sm:$0xff] %v1818_v30 }
 0x317   : > { %v1670_v17 = vpop.f32.mrf.mxu2 }
 0x318   : > { %v1800_v28 = vadd.f32 %v1799_v8, %v1670_v17  ;;  %v1995_v17 = vld [vmem:[#allocation2 + $0x40] sm:$0xff] (%p1966_p1) }
 0x31a   : > { %v1819_v16 = vadd.f32 %v1800_v28, %v1738_v0 }
 0x31b   : > { %v2000_v32 = vld [vmem:[#allocation2 + $0x70] sm:$0xff] (%p1966_p1) }
 0x31c   : > { %1835 = vst [vmem:[#allocation2 + $0x78] sm:$0xff] %v1819_v16  ;;  %v1998_v16 = vld [vmem:[#allocation2 + $0x38] sm:$0xff] (%p1966_p1) }
 0x31f   : > { %v1673_v60 = vpop.f32.mrf.mxu2 }
 0x320   : > { %v1803_v13 = vadd.f32 %v1802_v37, %v1673_v60  ;;  %1970 = sbr.rel (!%p1966_p1) target bundleno = 905 (0x389), region = 84  ;;  %v1989_v37 = vld [vmem:[#allocation2 + $0x58] sm:$0xff] (%p1966_p1) }
 0x322   : > { %v1820_v9 = vadd.f32 %v1803_v13, %v1739_v42  ;;  %v1987_v42 = vld [vmem:[#allocation2 + $0x30] sm:$0xff] (%p1966_p1) }
 0x323   : > { %v2001_v3 = vld [vmem:[#allocation2 + $0x78] sm:$0xff] (%p1966_p1) }
 0x324   : > { %1836 = vst [vmem:[#allocation2 + $0x28] sm:$0xff] %v1820_v9 }
 0x32b   : > { %v2002_v61 = vld [vmem:[#allocation2 + $0x28] sm:$0xff] }
 0x33b   : > { %v2074_v59 = vpop.permute.xlu2 %2073 }
 0x33c   : > { %v2135_v57 = vmul.f32 %v2074_v59, %v1991_v55 }
 0x33e   : > { %2151 = vst [vmem:[#allocation15 + $0x20] sm:$0xff] %v2135_v57 }
 0x343   : > { %v2079_v30 = vpop.permute.xlu2 %2078 }
 0x344   : > { %v2136_v8 = vmul.f32 %v2079_v30, %v1992_v52 }
 0x346   : > { %2152 = vst [vmem:[#allocation15 + $0x28] sm:$0xff] %v2136_v8 }
 0x34c   : > { %v2094_v0 = vpop.permute.xlu2 %2093 }
 0x34d   : > { %v2139_v28 = vmul.f32 %v2094_v0, %v1995_v17 }
 0x34f   : > { %2155 = vst [vmem:[#allocation15 + $0x40] sm:$0xff] %v2139_v28 }
 0x354   : > { %v2064_v9 = vpop.permute.xlu1 %2063 }
 0x355   : > { %v2133_v22 = vmul.f32 %v2064_v9, %v1989_v37  ;;  %v2054_v1 = vpop.permute.xlu0 %2053 }
 0x356   : > { %v2131_v35 = vmul.f32 %v2054_v1, %v1987_v42 }
 0x357   : > { %2149 = vst [vmem:[#allocation15 + $0x10] sm:$0xff] %v2133_v22 }
 0x358   : > { %2147 = vst [vmem:[#allocation15] sm:$0xff] %v2131_v35 }
 0x35b   : > { %v2109_v60 = vpop.permute.xlu2 %2108 }
 0x35c   : > { %v2142_v13 = vmul.f32 %v2109_v60, %v1998_v16  ;;  %v2069_v11 = vpop.permute.xlu1 %2068 }
 0x35d   : > { %v2134_v10 = vmul.f32 %v2069_v11, %v1990_v4 }
 0x35e   : > { %2158 = vst [vmem:[#allocation15 + $0x58] sm:$0xff] %v2142_v13 }
 0x35f   : > { %2150 = vst [vmem:[#allocation15 + $0x18] sm:$0xff] %v2134_v10 }
 0x363   : > { %v2124_v47 = vpop.permute.xlu2 %2123  ;;  %v2059_v6 = vpop.permute.xlu0 %2058 }
 0x364   : > { %v2145_v21 = vmul.f32 %v2124_v47, %v2001_v3  ;;  %v2132_v19 = vmul.f32 %v2059_v6, %v1988_v63 }
 0x365   : > { %v2089_v56 = vpop.permute.xlu1 %2088 }
 0x366   : > { %2161 = vst [vmem:[#allocation15 + $0x70] sm:$0xff] %v2145_v21  ;;  %v2138_v51 = vmul.f32 %v2089_v56, %v1994_v15 }
 0x367   : > { %2148 = vst [vmem:[#allocation15 + $0x8] sm:$0xff] %v2132_v19 }
 0x368   : > { %2154 = vst [vmem:[#allocation15 + $0x38] sm:$0xff] %v2138_v51 }
 0x36b   : > { %v2084_v39 = vpop.permute.xlu0 %2083 }
 0x36c   : > { %v2137_v38 = vmul.f32 %v2084_v39, %v1993_v25 }
 0x36e   : > { %2153 = vst [vmem:[#allocation15 + $0x30] sm:$0xff] %v2137_v38 }
 0x374   : > { %v2104_v2 = vpop.permute.xlu1 %2103 }
 0x375   : > { %v2141_v23 = vmul.f32 %v2104_v2, %v1997_v41  ;;  %v2099_v31 = vpop.permute.xlu0 %2098 }
 0x376   : > { %v2140_v48 = vmul.f32 %v2099_v31, %v1996_v50 }
 0x377   : > { %2157 = vst [vmem:[#allocation15 + $0x50] sm:$0xff] %v2141_v23 }
 0x378   : > { %2156 = vst [vmem:[#allocation15 + $0x48] sm:$0xff] %v2140_v48 }
 0x37c   : > { %v2119_v5 = vpop.permute.xlu1 %2118 }
 0x37d   : > { %v2144_v40 = vmul.f32 %v2119_v5, %v2000_v32  ;;  %v2114_v29 = vpop.permute.xlu0 %2113 }
 0x37e   : > { %v2143_v14 = vmul.f32 %v2114_v29, %v1999_v46 }
 0x37f   : > { %2160 = vst [vmem:[#allocation15 + $0x68] sm:$0xff] %v2144_v40 }
 0x380   : > { %2159 = vst [vmem:[#allocation15 + $0x60] sm:$0xff] %v2143_v14 }
 0x385   : > { %v2129_v7 = vpop.permute.xlu0 %2128 }
 0x386   : > { %v2146_v62 = vmul.f32 %v2129_v7, %v2002_v61 }
 0x388   : > { %2162 = vst [vmem:[#allocation15 + $0x78] sm:$0xff] %v2146_v62 }
 0x389 PF: > { %p2569_p4 = scmp.eq.s32.totalorder %s3064_s30, 1  ;;  %s3718_s19 = sld [smem:[#allocation28_spill]] }
 0x38a   : > { %s2992_s17 = smov [#allocation15]   ;;  %s2993_s12 = smov 128  }
 0x38b   : > { %s2171_s3 = sshll.u32 %s2992_s17, 4  ;;  %s2994_s16 = smov 8   ;;  %s2172_s3 = int_to_ptr.vmem [resolvable:$true] %s2171_s3 }
 0x38f   : > { %s2173_s0 = sshll.u32 %s3718_s19, 4  ;;  %s2174_s0 = int_to_ptr.hbm [resolvable:$true] %s2173_s0 }
 0x390   : > { %2546 = dma.vmem_to_hbm [thread:$0]  (%p2569_p4), %s2172_s3, 2048, %s2174_s0, [#allocation8], %s2993_s12, %s2993_s12, %s2994_s16  }
 0x391   : > { %2955 = dma.done.wait (%p2569_p4), [#allocation8], 2048  }
 0x392   : > { %2957 = vsyncadd (%p2569_p4), [#allocation8], 4294965248 }
 0x393 PF: > { %s27_s29 = sadd.s32 1, %s2980_s29   ;;  %s3719_s21 = sld [smem:[#allocation21_spill]] }
 0x394   : > { %p24_p5 = scmp.ge.s32.totalorder %s27_s29, 4   ;;  %s3720_s26 = sld [smem:[#allocation23_spill]] }
 0x395   : > { %s3721_s30 = sld [smem:[#allocation22_spill]]  ;;  %s3722_s24 = smov %s2964_s25 }
 0x396   : > { %s3724_s27 = smov %s2976_s28 }
 0x397   :  { %26 = sbr.rel (!%p24_p5) target bundleno = 15 (0xf), region = 150 }
 0x399   : > { %s3723_s25 = smov %s3719_s21 }
 0x39b   : > { %s3725_s28 = smov %s3721_s30 }
 0x39c   :  { %2190 = vsyncpa [#allocation7], 1 }
 0x39d   :  { %2192 = vsyncpa [#allocation7 + $0x1], 1 }
 0x39e   :  { %2193 = vsyncpa [#allocation10], 1 }
 0x39f   :  { %2195 = vsyncpa [#allocation10 + $0x1], 1 }
 0x3a0   :  { %2196 = vsyncpa [#allocation13], 1 }
 0x3a1   :  { %2198 = vsyncpa [#allocation13 + $0x1], 1 }
 0x3a2   :  { %2199 = vsyncpa [#allocation8], 1 }
 0x3a3   :  { %2201 = vsyncpa [#allocation8 + $0x1], 1 }

</bundles_post_ra>
